<compile_context>
chip_gen: v7x
topology: tpu7x:2x2x1
jax: 0.10.0
libtpu: 0.0.40
codegen_flags: <defaults>
</compile_context>

<pallas_src>
import functools

import jax
import jax.numpy as jnp
from jax.experimental import pallas as pl
from jax.experimental.pallas import tpu as pltpu

BN_EPS = 1e-5

RESNET101_LAYERS = ["conv1", "bn1", "relu", "maxpool", "layer1", "layer2",
                    "layer3", "layer4", "avgpool", "fc"]


# ---------------------------------------------------------------------------
# VMEM budget (per generation) and small helpers
# ---------------------------------------------------------------------------
_VMEM_LIMIT_CACHE = None


def _vmem_limit():
    """~100 MiB on 128 MiB parts (v5e/v6e), ~48 MiB on 64 MiB parts (v7x)."""
    global _VMEM_LIMIT_CACHE
    if _VMEM_LIMIT_CACHE is None:
        cap = 64 * 1024 * 1024
        try:
            info = pltpu.get_tpu_info()
            cap = int(getattr(info, "vmem_capacity_bytes", cap) or cap)
        except Exception:
            pass
        if cap >= 120 * 1024 * 1024:
            _VMEM_LIMIT_CACHE = 100 * 1024 * 1024
        else:
            _VMEM_LIMIT_CACHE = min(48 * 1024 * 1024, (cap * 3) // 4)
    return _VMEM_LIMIT_CACHE


def _round_up(x, m):
    return (x + m - 1) // m * m


def _pad2d(a, rows, cols):
    r, c = a.shape
    if r == rows and c == cols:
        return a
    return jnp.pad(a, ((0, rows - r), (0, cols - c)))


# ---------------------------------------------------------------------------
# Matmul kernels (MXU) with fused scale/bias/residual/ReLU epilogue
# ---------------------------------------------------------------------------
def _mm_ws_kernel(*refs, relu, has_residual):
    """Weight-resident single-K-step matmul: whole (Kp, Np) weight in VMEM."""
    if has_residual:
        x_ref, w_ref, s_ref, b_ref, r_ref, o_ref = refs
    else:
        x_ref, w_ref, s_ref, b_ref, o_ref = refs
        r_ref = None
    acc = jnp.dot(x_ref[...], w_ref[...], preferred_element_type=jnp.float32)
    acc = acc * s_ref[...] + b_ref[...]
    if has_residual:
        acc = acc + r_ref[...].astype(jnp.float32)
    if relu:
        acc = jnp.maximum(acc, 0.0)
    o_ref[...] = acc.astype(o_ref.dtype)


def _mm_acc_kernel(*refs, relu, has_residual):
    """K-tiled matmul with f32 VMEM accumulator (fallback for huge weights)."""
    if has_residual:
        x_ref, w_ref, s_ref, b_ref, r_ref, o_ref, acc_ref = refs
    else:
        x_ref, w_ref, s_ref, b_ref, o_ref, acc_ref = refs
        r_ref = None
    k = pl.program_id(2)
    prod = jnp.dot(x_ref[...], w_ref[...], preferred_element_type=jnp.float32)

    @pl.when(k == 0)
    def _():
        acc_ref[...] = prod

    @pl.when(k != 0)
    def _():
        acc_ref[...] += prod

    @pl.when(k == pl.num_programs(2) - 1)
    def _():
        acc = acc_ref[...] * s_ref[...] + b_ref[...]
        if has_residual:
            acc = acc + r_ref[...].astype(jnp.float32)
        if relu:
            acc = jnp.maximum(acc, 0.0)
        o_ref[...] = acc.astype(o_ref.dtype)


def _mm_bytes(tm, tk, tn, has_res):
    b = 2 * (tm * tk * 2) + 2 * (tk * tn * 2) + 2 * (tm * tn * 2) + tm * tn * 4
    if has_res:
        b += 2 * (tm * tn * 2)
    return b


def _matmul_tiles(M, K, N, has_res):
    limit = int(_vmem_limit() * 0.85)
    Kp = _round_up(K, 128)
    Np = _round_up(N, 128)
    # Hold the whole weight resident whenever it fits comfortably: the weight
    # block index is then constant across the grid and it is DMA'd only once.
    resident = 2 * (Kp * Np * 2) <= limit // 3
    if resident:
        tk, tn = Kp, Np
    else:
        tk = min(Kp, 2048)
        tn = min(Np, 512)
        Kp = _round_up(K, tk)
        Np = _round_up(N, tn)
    tm_cap = 1536 if _vmem_limit() > 80 * 1024 * 1024 else 1024
    m16 = max(16, _round_up(M, 16))          # bf16 packs 2 rows per sublane
    cands = sorted({min(tm_cap, m16)} |
                   {t for t in (1536, 1024, 768, 512, 384, 256, 192, 128,
                                96, 64, 48, 32, 16) if t <= tm_cap},
                   reverse=True)
    tm = 16
    for t in cands:
        if _mm_bytes(t, tk, tn, has_res) > limit:
            continue
        pad = _round_up(M, t) - M
        if pad <= max(t // 8, M // 8) or t == 16:   # avoid big M zero-padding
            tm = t
            break
    Mp = _round_up(M, tm)
    return tm, tk, tn, Mp, Kp, Np, resident


def matmul_affine(x, w, scale, bias, relu, residual=None):
    """(M,K)@(K,N) on the MXU (bf16 in, f32 accumulate) with fused per-channel
    scale/bias, optional residual add, optional ReLU.  Returns bf16."""
    M, K = x.shape
    N = w.shape[1]
    has_res = residual is not None
    tm, tk, tn, Mp, Kp, Np, resident = _matmul_tiles(M, K, N, has_res)

    x_p = _pad2d(x.astype(jnp.bfloat16), Mp, Kp)
    w_p = _pad2d(w.astype(jnp.bfloat16), Kp, Np)
    s_p = _pad2d(scale.reshape(1, N).astype(jnp.float32), 1, Np)
    b_p = _pad2d(bias.reshape(1, N).astype(jnp.float32), 1, Np)
    args = [x_p, w_p, s_p, b_p]
    if has_res:
        args.append(_pad2d(residual.astype(jnp.bfloat16), Mp, Np))

    cost = pl.CostEstimate(
        flops=2 * Mp * Kp * Np, transcendentals=0,
        bytes_accessed=2 * (Mp * Kp * max(1, Np // tn) + Kp * Np + Mp * Np)
        + 8 * Np)

    if resident:
        in_specs = [
            pl.BlockSpec((tm, Kp), lambda i: (i, 0)),
            pl.BlockSpec((Kp, Np), lambda i: (0, 0)),
            pl.BlockSpec((1, Np), lambda i: (0, 0)),
            pl.BlockSpec((1, Np), lambda i: (0, 0)),
        ]
        if has_res:
            in_specs.append(pl.BlockSpec((tm, Np), lambda i: (i, 0)))
        out = pl.pallas_call(
            functools.partial(_mm_ws_kernel, relu=relu, has_residual=has_res),
            out_shape=jax.ShapeDtypeStruct((Mp, Np), jnp.bfloat16),
            grid=(Mp // tm,),
            in_specs=in_specs,
            out_specs=pl.BlockSpec((tm, Np), lambda i: (i, 0)),
            compiler_params=pltpu.CompilerParams(
                dimension_semantics=("parallel",),
                vmem_limit_bytes=_vmem_limit()),
            cost_estimate=cost,
        )(*args)
    else:
        in_specs = [
            pl.BlockSpec((tm, tk), lambda i, j, k: (i, k)),
            pl.BlockSpec((tk, tn), lambda i, j, k: (k, j)),
            pl.BlockSpec((1, tn), lambda i, j, k: (0, j)),
            pl.BlockSpec((1, tn), lambda i, j, k: (0, j)),
        ]
        if has_res:
            in_specs.append(pl.BlockSpec((tm, tn), lambda i, j, k: (i, j)))
        out = pl.pallas_call(
            functools.partial(_mm_acc_kernel, relu=relu, has_residual=has_res),
            out_shape=jax.ShapeDtypeStruct((Mp, Np), jnp.bfloat16),
            grid=(Mp // tm, Np // tn, Kp // tk),
            in_specs=in_specs,
            out_specs=pl.BlockSpec((tm, tn), lambda i, j, k: (i, j)),
            scratch_shapes=[pltpu.VMEM((tm, tn), jnp.float32)],
            compiler_params=pltpu.CompilerParams(
                dimension_semantics=("parallel", "parallel", "arbitrary"),
                vmem_limit_bytes=_vmem_limit()),
            cost_estimate=cost,
        )(*args)

    if Mp != M or Np != N:
        out = out[:M, :N]
    return out


# ---------------------------------------------------------------------------
# In-kernel tap accumulation for stride-1 3x3 convs (no HBM im2col)
# ---------------------------------------------------------------------------
def _conv3x3_kernel(x_ref, w_ref, s_ref, b_ref, o_ref, acc_ref, *,
                    offsets, m, relu):
    # 9 taps = static contiguous slices of the flattened padded image; each is
    # an (m, C) x (C, Cout) MXU matmul accumulated into f32 VMEM scratch.
    for t, off in enumerate(offsets):
        prod = jnp.dot(x_ref[0, pl.ds(off, m), :], w_ref[t],
                       preferred_element_type=jnp.float32)
        if t == 0:
            acc_ref[...] = prod
        else:
            acc_ref[...] += prod
    acc = acc_ref[...] * s_ref[...] + b_ref[...]
    if relu:
        acc = jnp.maximum(acc, 0.0)
    o_ref[0] = acc.astype(o_ref.dtype)


def _conv3x3_vmem_bytes(hp, wp, c, m, cout):
    return (2 * (hp * wp * c * 2) + 2 * (m * cout * 2) + m * cout * 4
            + 2 * (9 * c * cout * 2) + 4 * cout * 4)


def conv3x3_s1(x_nhwc, p, relu):
    """Stride-1 3x3 conv + folded BN (+ReLU).  Returns None if the per-image
    blocks would not fit VMEM (caller falls back to im2col)."""
    kh, kw, cin, cout = p["kshape"]
    n, h, w, c = x_nhwc.shape
    hp, wp = h + 3, w + 2      # pad: top 1, bottom 2 (flat-view halo), l/r 1
    m = h * wp                 # stride-1 flat output rows (2 garbage cols/row)
    if _conv3x3_vmem_bytes(hp, wp, c, m, cout) > int(_vmem_limit() * 0.85):
        return None
    xp = jnp.pad(x_nhwc.astype(jnp.bfloat16), ((0, 0), (1, 2), (1, 1), (0, 0)))
    xf = xp.reshape(n, hp * wp, c)
    offsets = tuple(dy * wp + dx for dy in range(3) for dx in range(3))
    w9 = p["w"].reshape(9, cin, cout).astype(jnp.bfloat16)
    s2 = p["scale"].reshape(1, cout).astype(jnp.float32)
    b2 = p["bias"].reshape(1, cout).astype(jnp.float32)
    cost = pl.CostEstimate(
        flops=2 * n * m * 9 * cin * cout, transcendentals=0,
        bytes_accessed=n * (hp * wp * c * 2 + m * cout * 2) + 9 * cin * cout * 2)
    out = pl.pallas_call(
        functools.partial(_conv3x3_kernel, offsets=offsets, m=m, relu=relu),
        out_shape=jax.ShapeDtypeStruct((n, m, cout), jnp.bfloat16),
        grid=(n,),
        in_specs=[
            pl.BlockSpec((1, hp * wp, c), lambda i: (i, 0, 0)),
            pl.BlockSpec((9, cin, cout), lambda i: (0, 0, 0)),
            pl.BlockSpec((1, cout), lambda i: (0, 0)),
            pl.BlockSpec((1, cout), lambda i: (0, 0)),
        ],
        out_specs=pl.BlockSpec((1, m, cout), lambda i: (i, 0, 0)),
        scratch_shapes=[pltpu.VMEM((m, cout), jnp.float32)],
        compiler_params=pltpu.CompilerParams(
            dimension_semantics=("parallel",),
            vmem_limit_bytes=_vmem_limit()),
        cost_estimate=cost,
    )(xf, w9, s2, b2)
    # drop the 2 garbage columns per row produced by the flat-offset trick
    return out.reshape(n, h, wp, cout)[:, :, :w, :]


# ---------------------------------------------------------------------------
# Max-pool 3x3 / stride 2: in-kernel taps over the padded image (no HBM taps)
# ---------------------------------------------------------------------------
def _maxpool_kernel(x_ref, o_ref, *, offsets, m):
    o_ref[0] = x_ref[0, pl.ds(offsets[0], m), :]
    for off in offsets[1:]:
        o_ref[0] = jnp.maximum(o_ref[0], x_ref[0, pl.ds(off, m), :])


def maxpool_3x3_s2(x_nhwc):
    n, h, w, c = x_nhwc.shape
    hp, wp = h + 3, w + 2
    xp = jnp.pad(x_nhwc, ((0, 0), (1, 2), (1, 1), (0, 0)),
                 constant_values=-1e30)
    xf = xp.reshape(n, hp * wp, c)
    m = h * wp
    offsets = tuple(dy * wp + dx for dy in range(3) for dx in range(3))
    # Per-image block easily fits VMEM at typical DeepLab resolutions (<=513).
    out = pl.pallas_call(
        functools.partial(_maxpool_kernel, offsets=offsets, m=m),
        out_shape=jax.ShapeDtypeStruct((n, m, c), x_nhwc.dtype),
        grid=(n,),
        in_specs=[pl.BlockSpec((1, hp * wp, c), lambda i: (i, 0, 0))],
        out_specs=pl.BlockSpec((1, m, c), lambda i: (i, 0, 0)),
        compiler_params=pltpu.CompilerParams(
            dimension_semantics=("parallel",),
            vmem_limit_bytes=_vmem_limit()),
    )(xf)
    ho = (h - 1) // 2 + 1
    wo = (w - 1) // 2 + 1
    out = out.reshape(n, h, wp, c)[:, ::2, ::2, :]
    return out[:, :ho, :wo, :]


def _mean_reduce_kernel(x_ref, o_ref):
    o_ref[...] = jnp.mean(x_ref[...].astype(jnp.float32), axis=1).astype(o_ref.dtype)


def global_avg_pool(x_nhwc):
    n, h, w, c = x_nhwc.shape
    xm = x_nhwc.reshape(n, h * w, c)
    return pl.pallas_call(
        _mean_reduce_kernel,
        out_shape=jax.ShapeDtypeStruct((n, c), jnp.float32),
        grid=(1,),
        in_specs=[pl.BlockSpec((n, h * w, c), lambda i: (0, 0, 0))],
        out_specs=pl.BlockSpec((n, c), lambda i: (0, 0)),
        compiler_params=pltpu.CompilerParams(vmem_limit_bytes=_vmem_limit()),
    )(xm)


# ---------------------------------------------------------------------------
# Glue: im2col (strided convs only) and the conv dispatcher
# ---------------------------------------------------------------------------
def im2col(x_nhwc, kh, kw, stride, pad):
    n, h, w, c = x_nhwc.shape
    xp = jnp.pad(x_nhwc, ((0, 0), (pad, pad), (pad, pad), (0, 0)))
    ho = (h + 2 * pad - kh) // stride + 1
    wo = (w + 2 * pad - kw) // stride + 1
    cols = []
    for dy in range(kh):
        for dx in range(kw):
            cols.append(xp[:, dy:dy + stride * ho:stride,
                           dx:dx + stride * wo:stride, :])
    patches = jnp.concatenate(cols, axis=-1)            # (n, ho, wo, kh*kw*c)
    return patches.reshape(n * ho * wo, kh * kw * c), (n, ho, wo)


def conv_bn(x_nhwc, p, stride, relu, residual=None):
    kh, kw, cin, cout = p["kshape"]
    if kh == 1 and kw == 1:
        if stride > 1:
            x_nhwc = x_nhwc[:, ::stride, ::stride, :]
        n, ho, wo, _ = x_nhwc.shape
        xm = x_nhwc.reshape(n * ho * wo, cin)
    else:
        if kh == 3 and kw == 3 and stride == 1 and residual is None:
            out = conv3x3_s1(x_nhwc, p, relu)
            if out is not None:
                return out
        # TODO(synk): stride-2 spatial convs (and the rare VMEM-overflow
        # fallback) still materialize im2col patches in HBM.
        xm, (n, ho, wo) = im2col(x_nhwc, kh, kw, stride, p["pad"])
    res2d = (residual.reshape(n * ho * wo, cout)
             if residual is not None else None)
    out = matmul_affine(xm, p["w"], p["scale"], p["bias"], relu, res2d)
    return out.reshape(n, ho, wo, cout)


# ---------------------------------------------------------------------------
# Deterministic synthetic parameters (ResNet-101 shapes)
# ---------------------------------------------------------------------------
class ParamGen:
    def __init__(self, key):
        self.key = key
        self.i = 0

    def _k(self):
        k = jax.random.fold_in(self.key, self.i)
        self.i += 1
        return k

    def conv_params(self, cin, cout, k, pad=0):
        fan_in = cin * k * k
        w = jax.random.normal(self._k(), (k, k, cin, cout), jnp.float32)
        w = w * jnp.sqrt(2.0 / fan_in)
        return {"w": w.reshape(k * k * cin, cout).astype(jnp.bfloat16),
                "scale": jnp.ones((cout,), jnp.float32),
                "bias": jnp.zeros((cout,), jnp.float32),
                "kshape": (k, k, cin, cout), "pad": pad}

    def bn_fold(self, c):
        gamma = 1.0 + 0.1 * jax.random.normal(self._k(), (c,), jnp.float32)
        beta = 0.1 * jax.random.normal(self._k(), (c,), jnp.float32)
        rmean = 0.1 * jax.random.normal(self._k(), (c,), jnp.float32)
        rvar = jnp.abs(1.0 + 0.1 * jax.random.normal(self._k(), (c,), jnp.float32))
        scale = gamma / jnp.sqrt(rvar + BN_EPS)
        bias = beta - rmean * scale
        return scale, bias

    def conv_bn_params(self, cin, cout, k, pad=0):
        p = self.conv_params(cin, cout, k, pad)
        p["scale"], p["bias"] = self.bn_fold(cout)
        return p

    def linear_params(self, cin, cout):
        w = jax.random.normal(self._k(), (cin, cout), jnp.float32)
        w = w * jnp.sqrt(1.0 / cin)
        b = 0.1 * jax.random.normal(self._k(), (cout,), jnp.float32)
        return {"w": w.astype(jnp.bfloat16),
                "scale": jnp.ones((cout,), jnp.float32), "bias": b,
                "kshape": (1, 1, cin, cout), "pad": 0}


def make_bottleneck_params(pg, cin, cmid, cout, stride):
    p = {"conv1": pg.conv_bn_params(cin, cmid, 1),
         "conv2": pg.conv_bn_params(cmid, cmid, 3, pad=1),
         "conv3": pg.conv_bn_params(cmid, cout, 1),
         "stride": stride}
    if stride != 1 or cin != cout:
        p["downsample"] = pg.conv_bn_params(cin, cout, 1)
    return p


def make_resnet101_params(key):
    pg = ParamGen(key)
    params = {"conv1": pg.conv_params(3, 64, 7, pad=3)}
    s, b = pg.bn_fold(64)
    params["bn1"] = {"scale": s, "bias": b}
    cfg = [("layer1", 3, 64, 256, 1), ("layer2", 4, 128, 512, 2),
           ("layer3", 23, 256, 1024, 2), ("layer4", 3, 512, 2048, 2)]
    cin = 64
    for name, nblocks, cmid, cout, stride in cfg:
        blocks = []
        for bi in range(nblocks):
            blocks.append(make_bottleneck_params(pg, cin, cmid, cout,
                                                 stride if bi == 0 else 1))
            cin = cout
        params[name] = blocks
    params["fc"] = pg.linear_params(2048, 1000)
    return params


# ---------------------------------------------------------------------------
# Forward pass (mirrors ModifiedResNet101: keep layers up to & incl. output_layer)
# ---------------------------------------------------------------------------
def bottleneck_forward(x, p):
    identity = (conv_bn(x, p["downsample"], p["stride"], relu=False)
                if "downsample" in p else x)
    out = conv_bn(x, p["conv1"], 1, relu=True)
    out = conv_bn(out, p["conv2"], p["stride"], relu=True)
    # residual add + final ReLU fused into conv3's matmul epilogue
    out = conv_bn(out, p["conv3"], 1, relu=True, residual=identity)
    return out


def kept_layers(output_layer):
    if output_layer in RESNET101_LAYERS:
        return RESNET101_LAYERS[:RESNET101_LAYERS.index(output_layer) + 1]
    return list(RESNET101_LAYERS)


def modified_resnet101_forward(x_nchw, params, output_layer="layer4"):
    keep = kept_layers(output_layer)
    x = jnp.transpose(x_nchw, (0, 2, 3, 1)).astype(jnp.bfloat16)  # NCHW -> NHWC
    if "conv1" in keep:
        p = dict(params["conv1"])
        if "bn1" in keep:  # fold bn1 (and relu) into conv1's matmul epilogue
            p = dict(p, scale=params["bn1"]["scale"], bias=params["bn1"]["bias"])
        x = conv_bn(x, p, stride=2, relu=("relu" in keep))
    if "maxpool" in keep:
        x = maxpool_3x3_s2(x)
    for name in ("layer1", "layer2", "layer3", "layer4"):
        if name not in keep:
            continue
        for bp in params[name]:
            x = bottleneck_forward(x, bp)
    if "avgpool" in keep:
        n, h, w, c = x.shape
        x = global_avg_pool(x).reshape(n, 1, 1, c)
    if "fc" in keep:
        # TODO(synk): with output_layer=None/'fc' the original nn.Sequential has
        # no torch.flatten before fc and would error on (N,2048,1,1); we apply
        # fc to flattened features instead.
        n, h, w, c = x.shape
        p = params["fc"]
        return matmul_affine(x.reshape(n, h * w * c), p["w"], p["scale"],
                             p["bias"], relu=False).astype(jnp.float32)
    return jnp.transpose(x, (0, 3, 1, 2)).astype(jnp.float32)  # NHWC -> NCHW


if __name__ == "__main__":
    key = jax.random.PRNGKey(0)
    pkey, xkey = jax.random.split(key)
    params = make_resnet101_params(pkey)

    # small input consistent with ResNet-101: NCHW, 3 channels
    x = jax.random.normal(xkey, (2, 3, 64, 64), jnp.float32)

    # DeepLabV3+ backbone use-case: truncate at (and include) 'layer4'
    out = modified_resnet101_forward(x, params, output_layer="layer4")
    out = jax.block_until_ready(out)
    assert out.shape == (2, 2048, 2, 2), out.shape
    assert bool(jnp.all(jnp.isfinite(out))), "non-finite output"
    print("KERNEL_OK")
</pallas_src>

<mosaic_0001>
module attributes {stable_mosaic.version = 11 : i64} {
  func.func @_mm_ws_kernel(%arg0: i32, %arg1: memref<1024x256xbf16, #tpu.memory_space<vmem>>, %arg2: memref<256x128xbf16, #tpu.memory_space<vmem>>, %arg3: memref<1x128xf32, #tpu.memory_space<vmem>>, %arg4: memref<1x128xf32, #tpu.memory_space<vmem>>, %arg5: memref<1024x128xbf16, #tpu.memory_space<vmem>>) attributes {dimension_semantics = [#tpu.dimension_semantics<parallel>], iteration_bounds = array<i64: 2>, scalar_prefetch = 0 : i64, scratch_operands = 0 : i64, tpu.core_type = #tpu.core_type<tc>, window_params = [{transform_indices = @transform_0, window_bounds = array<i64: 1024, 256>}, {pipeline_mode = #tpu.pipeline_mode<synchronous>, transform_indices = @transform_1, window_bounds = array<i64: 256, 128>}, {pipeline_mode = #tpu.pipeline_mode<synchronous>, transform_indices = @transform_2, window_bounds = array<i64: 1, 128>}, {pipeline_mode = #tpu.pipeline_mode<synchronous>, transform_indices = @transform_3, window_bounds = array<i64: 1, 128>}, {transform_indices = @transform_4, window_bounds = array<i64: 1024, 128>}]} {
    %c0 = arith.constant 0 : index
    %c0_0 = arith.constant 0 : index
    %0 = vector.load %arg1[%c0, %c0_0] : memref<1024x256xbf16, #tpu.memory_space<vmem>>, vector<1024x256xbf16>
    %c0_1 = arith.constant 0 : index
    %c0_2 = arith.constant 0 : index
    %1 = vector.load %arg2[%c0_1, %c0_2] : memref<256x128xbf16, #tpu.memory_space<vmem>>, vector<256x128xbf16>
    %cst = arith.constant dense<0.000000e+00> : vector<1024x128xf32>
    %2 = tpu.matmul %0, %1, %cst {dimension_numbers = #tpu.dot_dimension_numbers<[1], [0], [0], [1], [0, 0, 1, 1], [], []>} : vector<1024x256xbf16>, vector<256x128xbf16>, vector<1024x128xf32> -> vector<1024x128xf32>
    %c0_3 = arith.constant 0 : index
    %c0_4 = arith.constant 0 : index
    %3 = vector.load %arg3[%c0_3, %c0_4] : memref<1x128xf32, #tpu.memory_space<vmem>>, vector<1x128xf32>
    %4 = vector.broadcast %3 : vector<1x128xf32> to vector<1024x128xf32>
    %5 = arith.mulf %2, %4 : vector<1024x128xf32>
    %c0_5 = arith.constant 0 : index
    %c0_6 = arith.constant 0 : index
    %6 = vector.load %arg4[%c0_5, %c0_6] : memref<1x128xf32, #tpu.memory_space<vmem>>, vector<1x128xf32>
    %7 = vector.broadcast %6 : vector<1x128xf32> to vector<1024x128xf32>
    %8 = arith.addf %5, %7 : vector<1024x128xf32>
    %cst_7 = arith.constant 0.000000e+00 : f32
    %9 = vector.broadcast %cst_7 : f32 to vector<1024x128xf32>
    %10 = arith.maximumf %8, %9 : vector<1024x128xf32>
    %11 = arith.truncf %10 : vector<1024x128xf32> to vector<1024x128xbf16>
    %c0_8 = arith.constant 0 : index
    %c0_9 = arith.constant 0 : index
    %12 = vector.load %arg5[%c0_8, %c0_9] : memref<1024x128xbf16, #tpu.memory_space<vmem>>, vector<1024x128xbf16>
    tpu.vector_store %arg5[%c0_8, %c0_9], %11 {strides = array<i32>} : memref<1024x128xbf16, #tpu.memory_space<vmem>>, vector<1024x128xbf16>,
    return
  }
  func.func @transform_0(%arg0: i32) -> (i32, i32) {
    %c0_i32 = arith.constant 0 : i32
    %c0_i32_0 = arith.constant 0 : i32
    return %arg0, %c0_i32 : i32, i32
  }
  func.func @transform_1(%arg0: i32) -> (i32, i32) {
    %c0_i32 = arith.constant 0 : i32
    %c0_i32_0 = arith.constant 0 : i32
    %c0_i32_1 = arith.constant 0 : i32
    return %c0_i32, %c0_i32_0 : i32, i32
  }
  func.func @transform_2(%arg0: i32) -> (i32, i32) {
    %c0_i32 = arith.constant 0 : i32
    %c0_i32_0 = arith.constant 0 : i32
    %c0_i32_1 = arith.constant 0 : i32
    return %c0_i32, %c0_i32_0 : i32, i32
  }
  func.func @transform_3(%arg0: i32) -> (i32, i32) {
    %c0_i32 = arith.constant 0 : i32
    %c0_i32_0 = arith.constant 0 : i32
    %c0_i32_1 = arith.constant 0 : i32
    return %c0_i32, %c0_i32_0 : i32, i32
  }
  func.func @transform_4(%arg0: i32) -> (i32, i32) {
    %c0_i32 = arith.constant 0 : i32
    %c0_i32_0 = arith.constant 0 : i32
    return %arg0, %c0_i32 : i32, i32
  }
}

</mosaic_0001>

<bundles_post_ra>
// kernel: tpu_custom_call.1
= control target key start
LH: loop header
LB: loop body
LE: loop exit
PB: predicated region body
PF: predicated region fallthrough
CT: control target
= control target key end

     0   :  { %9 = vsyncpa [#allocation3], 0  ;;  %s4794_s0 = inlined_call_operand.hbm [shape: bf16[2048,256], index: 0, kind: input, shape index: {}]   ;;  %s4795_s1 = inlined_call_operand.hbm [shape: bf16[256,128], index: 1, kind: input, shape index: {}]   ;;  %s4796_s2 = inlined_call_operand.vmem [shape: f32[1,128], index: 2, kind: input, shape index: {}]   ;;  %s4797_s3 = inlined_call_operand.vmem [shape: f32[1,128], index: 3, kind: input, shape index: {}]   ;;  %s4798_s4 = inlined_call_operand.hbm [shape: bf16[2048,128], index: 4, kind: output, shape index: {}]  }
   0x1   :  { %11 = vsyncpa [#allocation3 + $0x1], 0 }
   0x2   :  { %12 = vsyncpa [#allocation6], 0 }
   0x3   :  { %13 = vsyncpa [#allocation4], 0 }
   0x4   :  { %15 = vsyncpa [#allocation4 + $0x1], 0  ;;  %s4087_s15 = smov 0   ;;  %s4089_s16 = smov 0  }
   0x5   :  { %s4091_s17 = smov 0   ;;  %s4093_s18 = smov 0  }
   0x6 LB: > { %s4108_s19 = sadd.s32 4294967295, %s4050_s18   ;;  %s2811_s20 = sadd.s32 4294967294, %s4050_s18   ;;  %s4050_s18 = sphi %s4093_s18, %s4818_s18   ;;  %s4046_s17 = sphi %s4091_s17, %s4817_s17   ;;  %s4042_s16 = sphi %s4089_s16, %s4816_s16   ;;  %s4038_s15 = sphi %s4087_s15, %s4815_s15  }
   0x7   : > { %p41_p0 = scmp.ne.s32.totalorder %s4042_s16, %s4038_s15  ;;  %p4799_p1 = scmp.eq.s32.totalorder %s4108_s19, 0 }
   0x8   : > { %p134_p3 = scmp.eq.s32.totalorder %s2811_s20, 1  ;;  %p2812_p5 = scmp.ge.s32.totalorder %s4050_s18, 1 }
   0x9   : > { %p4117_p4 = por %p4799_p1, %p41_p0  ;;  %p141_p7 = scmp.lt.s32.totalorder %s4050_s18, 3 }
   0xa   : > { %p4122_p6 = por %p134_p3, %p41_p0  ;;  %s4052_s24 = smov [#allocation5]  }
   0xb   : > { %s4802_s21 = scalar_select %p4117_p4, 1, 0 }
   0xc   : > { %s4803_s22 = scalar_select %p4122_p6, 1, 0 }
   0xd   : > { %p4127_p8 = pnand %p2812_p5, %p141_p7  ;;  %s153_s25 = sshll.u32 %s4052_s24, 4  ;;  %s4131_s25 = int_to_ptr.vmem [resolvable:$true] %s153_s25 }
   0xe   : > { %s4143_s27 = sadd.s32 1, %s4050_s18   ;;  %s28_s28 = sadd.s32 1, %s4046_s17 }
   0xf   : > { %s4804_s23 = scalar_select %p4127_p8, 1, 0 }
  0x10   : > { %p3656_p9 = pneg %p4127_p8  ;;  %s25_s29 = ssub.s32 %s4050_s18, %s4143_s27 }
  0x11   : > { %s3922_s6 = scalar_lea.hbm %s4795_s1, 2048 }
  0x12   : > { %p4138_p11 = pnand %p3656_p9, %p4799_p1  ;;  %p3923_p12 = scmp.ne.s32.totalorder %s4795_s1, %s3922_s6 }
  0x13   : > { %p3929_p5 = scmp.lt.u32.totalorder %s3922_s6, %s4795_s1 }
  0x14   : > { %p3924_p13 = pneg %p4138_p11 }
  0x16   : > { %p3925_p0 = pnand %p3924_p13, %p3923_p12 }
  0x18   : > { %p3926_p3 = pneg %p3925_p0 }
  0x1a   : > { %p3931_p7 = pnand %p3929_p5, %p3926_p3 }
  0x1c   : > { %3934 = shalt.err (!%p3931_p7)
}
  0x1d   : > { %s3935_s11 = scalar_lea.vmem %s4131_s25, 2048  ;;  %p3943_p2 = scmp.lt.s32.totalorder %s4131_s25, %s4131_s25 }
  0x1e   : > { %p3936_p9 = scmp.ne.s32.totalorder %s4131_s25, %s3935_s11  ;;  %p3944_p6 = scmp.lt.s32.totalorder %s3935_s11, %s3935_s11 }
  0x20   : > { %p3938_p10 = pnand %p3936_p9, %p3924_p13  ;;  %p3945_p4 = por %p3944_p6, %p3943_p2 }
  0x22   : > { %p3939_p1 = pneg %p3938_p10 }
  0x24   : > { %p3946_p8 = pnand %p3945_p4, %p3939_p1 }
  0x26   : > { %3949 = shalt.err (!%p3946_p8)
}
  0x27   : > { %s4053_s12 = smov 64   ;;  %s4054_s13 = smov 4  }
  0x28   : > { %3659 = dma.hbm_to_vmem [thread:$0]  (!%p4138_p11), %s4795_s1, 2048, %s4131_s25, [#allocation6], %s4053_s12, %s4053_s12, %s4054_s13  }
  0x29   : > { %p26_p2 = scmp.eq.s32.totalorder %s25_s29, 0  ;;  %p35_p1 = scmp.ne.s32.totalorder %s4046_s17, %s4042_s16 }
  0x2a   : > { %p36_p4 = scmp.eq.s32.totalorder %s4050_s18, 0  ;;  %p3669_p6 = scmp.lt.s32.totalorder %s4050_s18, 2 }
  0x2b   : > { %s4174_s24 = scalar_select %p26_p2, %s4046_s17, %s28_s28  }
  0x2c   : > { %p37_p8 = por %p36_p4, %p35_p1  ;;  %p4806_p10 = scmp.eq.s32.totalorder %s4108_s19, 1 }
  0x2d   : > { %s173_s5 = sand.u32 1, %s4046_s17   ;;  %s3103_s6 = sshll.u32 %s4050_s18, 14 }
  0x2e   : > { %p4178_p12 = por %p4806_p10, %p35_p1  ;;  %s2815_s7 = sshll.u32 %s173_s5, 10 }
  0x2f   : > { %s4187_s9 = scalar_lea.hbm %s4794_s0, %s3103_s6  ;;  %s177_s25 = scalar_lea.vmem [#allocation2], %s2815_s7 }
  0x30   : > { %s185_s28 = sshll.u32 %s177_s25, 4  ;;  %p4189_p11 = pnand %p3669_p6, %p37_p8  ;;  %s4193_s28 = int_to_ptr.vmem [resolvable:$true] %s185_s28 }
  0x31   : > { %s4195_s10 = scalar_lea.sflag [#allocation3], %s173_s5  ;;  %s3950_s11 = scalar_lea.hbm %s4187_s9, 16384 }
  0x32   : > { %p3951_p13 = scmp.ne.s32.totalorder %s4187_s9, %s3950_s11  ;;  %p3952_p0 = pneg %p4189_p11 }
  0x33   : > { %s3955_s14 = scalar_lea.hbm %s4794_s0, 32768  ;;  %p3956_p7 = scmp.lt.u32.totalorder %s4187_s9, %s4794_s0 }
  0x34   : > { %p3953_p3 = pnand %p3952_p0, %p3951_p13  ;;  %p3957_p9 = scmp.lt.u32.totalorder %s3955_s14, %s3950_s11 }
  0x35   : > { %p3959_p1 = scmp.lt.u32.totalorder %s3950_s11, %s4187_s9 }
  0x36   : > { %p3954_p5 = pneg %p3953_p3  ;;  %p3958_p2 = por %p3957_p9, %p3956_p7 }
  0x38   : > { %p3960_p4 = por %p3959_p1, %p3958_p2 }
  0x3a   : > { %p3961_p6 = pnand %p3960_p4, %p3954_p5 }
  0x3c   : > { %3964 = shalt.err (!%p3961_p6)
}
  0x3d   : > { %s3965_s5 = scalar_lea.vmem %s4193_s28, 16384  ;;  %s4055_s7 = smov [#allocation2]  }
  0x3e   : > { %p3966_p8 = scmp.ne.s32.totalorder %s4193_s28, %s3965_s5  ;;  %s3970_s26 = sshll.u32 %s4055_s7, 4  ;;  %s3971_s26 = int_to_ptr.vmem [resolvable:$false] %s3970_s26 }
  0x3f   : > { %s3972_s8 = scalar_lea.vmem %s3971_s26, 32768  ;;  %p3973_p3 = scmp.lt.s32.totalorder %s4193_s28, %s3971_s26 }
  0x40   : > { %p3968_p10 = pnand %p3966_p8, %p3952_p0  ;;  %p3974_p7 = scmp.lt.s32.totalorder %s3972_s8, %s3965_s5 }
  0x42   : > { %p3969_p13 = pneg %p3968_p10  ;;  %p3975_p9 = por %p3974_p7, %p3973_p3 }
  0x44   : > { %p3976_p2 = pnand %p3975_p9, %p3969_p13 }
  0x46   : > { %3979 = shalt.err (!%p3976_p2)
}
  0x47   : > { %s4056_s25 = smov 128   ;;  %s4057_s11 = smov 8  }
  0x48   : > { %3663 = dma.hbm_to_vmem [thread:$0]  (!%p4189_p11), %s4187_s9, 16384, %s4193_s28, %s4195_s10, %s4056_s25, %s4056_s25, %s4057_s11  }
  0x49   : > { %p4809_p0 = scmp.ne.s32.totalorder %s4804_s23, 0 }
  0x4a   : > { %s4226_s12 = sand.u32 (!%p4809_p0), 1, %s4042_s16   ;;  %p4810_p5 = scmp.ne.s32.totalorder (!%p4809_p0), %s4802_s21, 0 }
  0x4b   : > { %197 = sbr.rel (%p4809_p0) target bundleno = 637 (0x27d), region = 36  ;;  %s2820_s13 = sshll.u32 (!%p4809_p0), %s4226_s12, 10 }
  0x4c   : > { %s200_s14 = scalar_lea.sflag (!%p4809_p0), [#allocation3], %s4226_s12  ;;  %s4230_s20 = scalar_lea.vmem (!%p4809_p0), [#allocation2], %s2820_s13 }
  0x52   : > { %4025 = dma.done.wait (%p4810_p5), %s200_s14, 16384  }
  0x53   : > { %4027 = vsyncadd (%p4810_p5), %s200_s14, 4294950912  ;;  %p4811_p11 = scmp.eq.s32.totalorder %s4108_s19, 0 }
  0x55   : > { %4029 = dma.done.wait (%p4811_p11), [#allocation6], 2048   ;;  %p4812_p1 = pmov %p4811_p11 }
  0x56   : > { %v4058_v0 = vmov 0   ;;  %v3712_v1 = vld [vmem:[#allocation5] sm:$0xff]   ;;  %v3713_v2 = vld [vmem:[#allocation5 + $0x8] sm:$0xff]   ;;  %v3714_v3 = vld [vmem:[#allocation5 + $0x10] sm:$0xff]   ;;  %s2822_s29 = sshll.u32 %s4226_s12, 9  ;;  %s3232_s8 = sshll.u32 %s4108_s19, 13 }
  0x57   : > { %4031 = vsyncadd (%p4812_p1), [#allocation6], 4294965248  ;;  %1131 = vmatprep.subr.bf16.mxu0 %v4058_v0  ;;  %3616 = vmatprep.subr.bf16.mxu1 %v4058_v0  ;;  %v3715_v4 = vld [vmem:[#allocation5 + $0x18] sm:$0xff]   ;;  %v3716_v5 = vld [vmem:[#allocation5 + $0x20] sm:$0xff]   ;;  %s4411_s10 = scalar_lea.vmem [#allocation7], %s2822_s29  ;;  %s4746_s14 = scalar_lea.hbm %s4798_s4, %s3232_s8 }
  0x58   : > { %1132 = vmatpush1.bf16.msra.mxu0 %v3712_v1  ;;  %3632 = vmatpush1.bf16.msra.mxu1 %v3712_v1  ;;  %v3730_v6 = vld [vmem:[%s4230_s20 + $0x4] ss:$8 sps:$4 sm:$0xff]   ;;  %v3718_v9 = vld [vmem:[#allocation5 + $0x30] sm:$0xff]   ;;  %v3719_v10 = vld [vmem:[#allocation5 + $0x38] sm:$0xff]   ;;  %s2728_s25 = sshll.u32 %s4411_s10, 4  ;;  %s2715_s19 = scalar_lea.sflag [#allocation4], %s4226_s12  ;;  %s4748_s25 = int_to_ptr.vmem [resolvable:$true] %s2728_s25 }
  0x59   : > { %1133 = vmatprep.subr.bf16.mxu0 %v4058_v0  ;;  %3617 = vmatprep.subr.bf16.mxu1 %v4058_v0  ;;  %v3717_v7 = vld [vmem:[#allocation5 + $0x28] sm:$0xff]   ;;  %v3720_v11 = vld [vmem:[#allocation5 + $0x40] sm:$0xff]   ;;  %v3722_v13 = vld [vmem:[#allocation5 + $0x50] sm:$0xff]   ;;  %s4059_s21 = smov [#allocation7]  }
  0x5a   : > { %v3733_v8 = vld [vmem:[%s4230_s20 + $0x204] ss:$8 sps:$4 sm:$0xff]   ;;  %1163 = vmatprep.mubr.bf16.mxu0 %v3730_v6  ;;  %v3723_v14 = vld [vmem:[#allocation5 + $0x58] sm:$0xff]   ;;  %v3726_v17 = vld [vmem:[#allocation5 + $0x70] sm:$0xff]   ;;  %s3984_s23 = sshll.u32 %s4059_s21, 4  ;;  %s3985_s23 = int_to_ptr.vmem [resolvable:$false] %s3984_s23 }
  0x5b   : > { %1419 = vmatprep.mubr.bf16.mxu1 %v3733_v8  ;;  %v3721_v12 = vld [vmem:[#allocation5 + $0x48] sm:$0xff]   ;;  %v3724_v15 = vld [vmem:[#allocation5 + $0x60] sm:$0xff]   ;;  %v3727_v18 = vld [vmem:[#allocation5 + $0x78] sm:$0xff]   ;;  %s3986_s9 = scalar_lea.vmem %s3985_s23, 16384  ;;  %p3987_p10 = scmp.lt.s32.totalorder %s4748_s25, %s3985_s23 }
  0x5c   : > { %1134 = vmatpush1.bf16.msra.mxu0 %v3713_v2  ;;  %3633 = vmatpush1.bf16.msra.mxu1 %v3713_v2  ;;  %v3725_v16 = vld [vmem:[#allocation5 + $0x68] sm:$0xff]   ;;  %v3734_v21 = vld [vmem:[%s4230_s20 + $0x14] ss:$8 sps:$4 sm:$0xff]   ;;  %v3738_v23 = vld [vmem:[%s4230_s20 + $0x10] ss:$8 sps:$4 sm:$0xff]  }
  0x5d   : > { %1135 = vmatprep.subr.bf16.mxu0 %v4058_v0  ;;  %3618 = vmatprep.subr.bf16.mxu1 %v4058_v0  ;;  %v3728_v19 = vld [vmem:[%s4230_s20] ss:$8 sps:$4 sm:$0xff]   ;;  %v3736_v22 = vld [vmem:[%s4230_s20 + $0x214] ss:$8 sps:$4 sm:$0xff]   ;;  %v3739_v24 = vld [vmem:[%s4230_s20 + $0x210] ss:$8 sps:$4 sm:$0xff]  }
  0x5e   : > { %v3731_v20 = vld [vmem:[%s4230_s20 + $0x200] ss:$8 sps:$4 sm:$0xff]   ;;  %v3740_v25 = vld [vmem:[%s4230_s20 + $0x24] ss:$8 sps:$4 sm:$0xff]   ;;  %v3746_v29 = vld [vmem:[%s4230_s20 + $0x34] ss:$8 sps:$4 sm:$0xff]  }
  0x5f   : > { %v3742_v26 = vld [vmem:[%s4230_s20 + $0x224] ss:$8 sps:$4 sm:$0xff]   ;;  %v3744_v27 = vld [vmem:[%s4230_s20 + $0x20] ss:$8 sps:$4 sm:$0xff]   ;;  %v3748_v30 = vld [vmem:[%s4230_s20 + $0x234] ss:$8 sps:$4 sm:$0xff]  }
  0x60   : > { %1136 = vmatpush1.bf16.msra.mxu0 %v3714_v3  ;;  %3634 = vmatpush1.bf16.msra.mxu1 %v3714_v3  ;;  %v3745_v28 = vld [vmem:[%s4230_s20 + $0x220] ss:$8 sps:$4 sm:$0xff]   ;;  %v3750_v31 = vld [vmem:[%s4230_s20 + $0x30] ss:$8 sps:$4 sm:$0xff]   ;;  %v3752_v33 = vld [vmem:[%s4230_s20 + $0x44] ss:$8 sps:$4 sm:$0xff]  }
  0x61   : > { %1137 = vmatprep.subr.bf16.mxu0 %v4058_v0  ;;  %3619 = vmatprep.subr.bf16.mxu1 %v4058_v0  ;;  %v3751_v32 = vld [vmem:[%s4230_s20 + $0x230] ss:$8 sps:$4 sm:$0xff]   ;;  %v3754_v34 = vld [vmem:[%s4230_s20 + $0x244] ss:$8 sps:$4 sm:$0xff]   ;;  %v3756_v35 = vld [vmem:[%s4230_s20 + $0x40] ss:$8 sps:$4 sm:$0xff]  }
  0x62   : > { %v3757_v36 = vld [vmem:[%s4230_s20 + $0x240] ss:$8 sps:$4 sm:$0xff]   ;;  %v3758_v37 = vld [vmem:[%s4230_s20 + $0x54] ss:$8 sps:$4 sm:$0xff]   ;;  %v3762_v39 = vld [vmem:[%s4230_s20 + $0x50] ss:$8 sps:$4 sm:$0xff]  }
  0x63   : > { %v3760_v38 = vld [vmem:[%s4230_s20 + $0x254] ss:$8 sps:$4 sm:$0xff]   ;;  %v3763_v40 = vld [vmem:[%s4230_s20 + $0x250] ss:$8 sps:$4 sm:$0xff]   ;;  %v3764_v41 = vld [vmem:[%s4230_s20 + $0x64] ss:$8 sps:$4 sm:$0xff]  }
  0x64   : > { %1138 = vmatpush1.bf16.msra.mxu0 %v3715_v4  ;;  %3635 = vmatpush1.bf16.msra.mxu1 %v3715_v4  ;;  %v3766_v42 = vld [vmem:[%s4230_s20 + $0x264] ss:$8 sps:$4 sm:$0xff]   ;;  %v3768_v43 = vld [vmem:[%s4230_s20 + $0x60] ss:$8 sps:$4 sm:$0xff]   ;;  %v3770_v45 = vld [vmem:[%s4230_s20 + $0x74] ss:$8 sps:$4 sm:$0xff]  }
  0x65   : > { %1139 = vmatprep.subr.bf16.mxu0 %v4058_v0  ;;  %3620 = vmatprep.subr.bf16.mxu1 %v4058_v0  ;;  %v3769_v44 = vld [vmem:[%s4230_s20 + $0x260] ss:$8 sps:$4 sm:$0xff]   ;;  %v3772_v46 = vld [vmem:[%s4230_s20 + $0x274] ss:$8 sps:$4 sm:$0xff]   ;;  %v3774_v47 = vld [vmem:[%s4230_s20 + $0x70] ss:$8 sps:$4 sm:$0xff]  }
  0x66   : > { %v3775_v48 = vld [vmem:[%s4230_s20 + $0x270] ss:$8 sps:$4 sm:$0xff]   ;;  %v3776_v49 = vld [vmem:[%s4230_s20 + $0x84] ss:$8 sps:$4 sm:$0xff]   ;;  %v3780_v51 = vld [vmem:[%s4230_s20 + $0x80] ss:$8 sps:$4 sm:$0xff]  }
  0x67   : > { %v3778_v50 = vld [vmem:[%s4230_s20 + $0x284] ss:$8 sps:$4 sm:$0xff]   ;;  %v3781_v52 = vld [vmem:[%s4230_s20 + $0x280] ss:$8 sps:$4 sm:$0xff]   ;;  %v3782_v53 = vld [vmem:[%s4230_s20 + $0x94] ss:$8 sps:$4 sm:$0xff]  }
  0x68   : > { %1140 = vmatpush1.bf16.msra.mxu0 %v3716_v5  ;;  %3636 = vmatpush1.bf16.msra.mxu1 %v3716_v5  ;;  %v3784_v54 = vld [vmem:[%s4230_s20 + $0x294] ss:$8 sps:$4 sm:$0xff]   ;;  %v3786_v55 = vld [vmem:[%s4230_s20 + $0x90] ss:$8 sps:$4 sm:$0xff]   ;;  %v3788_v57 = vld [vmem:[%s4230_s20 + $0xa4] ss:$8 sps:$4 sm:$0xff]  }
  0x69   : > { %1141 = vmatprep.subr.bf16.mxu0 %v4058_v0  ;;  %3621 = vmatprep.subr.bf16.mxu1 %v4058_v0  ;;  %v3787_v56 = vld [vmem:[%s4230_s20 + $0x290] ss:$8 sps:$4 sm:$0xff]   ;;  %v3790_v58 = vld [vmem:[%s4230_s20 + $0x2a4] ss:$8 sps:$4 sm:$0xff]   ;;  %v3792_v59 = vld [vmem:[%s4230_s20 + $0xa0] ss:$8 sps:$4 sm:$0xff]  }
  0x6a   : > { %v3793_v60 = vld [vmem:[%s4230_s20 + $0x2a0] ss:$8 sps:$4 sm:$0xff]   ;;  %v3794_v61 = vld [vmem:[%s4230_s20 + $0xb4] ss:$8 sps:$4 sm:$0xff]   ;;  %v3798_v63 = vld [vmem:[%s4230_s20 + $0xb0] ss:$8 sps:$4 sm:$0xff]  }
  0x6b   : > { %v3796_v62 = vld [vmem:[%s4230_s20 + $0x2b4] ss:$8 sps:$4 sm:$0xff]   ;;  %v3800_v1 = vld [vmem:[%s4230_s20 + $0xc4] ss:$8 sps:$4 sm:$0xff]   ;;  %v3804_v3 = vld [vmem:[%s4230_s20 + $0xc0] ss:$8 sps:$4 sm:$0xff]  }
  0x6c   : > { %1142 = vmatpush1.bf16.msra.mxu0 %v3717_v7  ;;  %3637 = vmatpush1.bf16.msra.mxu1 %v3717_v7  ;;  %v3802_v2 = vld [vmem:[%s4230_s20 + $0x2c4] ss:$8 sps:$4 sm:$0xff]   ;;  %v3805_v4 = vld [vmem:[%s4230_s20 + $0x2c0] ss:$8 sps:$4 sm:$0xff]   ;;  %v3806_v5 = vld [vmem:[%s4230_s20 + $0xd4] ss:$8 sps:$4 sm:$0xff]  }
  0x6d   : > { %1143 = vmatprep.subr.bf16.mxu0 %v4058_v0  ;;  %3622 = vmatprep.subr.bf16.mxu1 %v4058_v0  ;;  %v3808_v6 = vld [vmem:[%s4230_s20 + $0x2d4] ss:$8 sps:$4 sm:$0xff]   ;;  %v3810_v7 = vld [vmem:[%s4230_s20 + $0xd0] ss:$8 sps:$4 sm:$0xff]  }
  0x6e   : > { %v3811_v8 = vld [vmem:[%s4230_s20 + $0x2d0] ss:$8 sps:$4 sm:$0xff]  }
  0x70   : > { %1144 = vmatpush1.bf16.msra.mxu0 %v3718_v9  ;;  %3638 = vmatpush1.bf16.msra.mxu1 %v3718_v9  ;;  %v3812_v9 = vld [vmem:[%s4230_s20 + $0xe4] ss:$8 sps:$4 sm:$0xff]  }
  0x71   : > { %1145 = vmatprep.subr.bf16.mxu0 %v4058_v0  ;;  %3623 = vmatprep.subr.bf16.mxu1 %v4058_v0 }
  0x74   : > { %1146 = vmatpush1.bf16.msra.mxu0 %v3719_v10  ;;  %3639 = vmatpush1.bf16.msra.mxu1 %v3719_v10  ;;  %v3814_v10 = vld [vmem:[%s4230_s20 + $0x2e4] ss:$8 sps:$4 sm:$0xff]  }
  0x75   : > { %1147 = vmatprep.subr.bf16.mxu0 %v4058_v0  ;;  %3624 = vmatprep.subr.bf16.mxu1 %v4058_v0 }
  0x78   : > { %1148 = vmatpush1.bf16.msra.mxu0 %v3720_v11  ;;  %3640 = vmatpush1.bf16.msra.mxu1 %v3720_v11  ;;  %v3816_v11 = vld [vmem:[%s4230_s20 + $0xe0] ss:$8 sps:$4 sm:$0xff]  }
  0x79   : > { %1149 = vmatprep.subr.bf16.mxu0 %v4058_v0  ;;  %3625 = vmatprep.subr.bf16.mxu1 %v4058_v0 }
  0x7c   : > { %1150 = vmatpush1.bf16.msra.mxu0 %v3721_v12  ;;  %3641 = vmatpush1.bf16.msra.mxu1 %v3721_v12  ;;  %v3817_v12 = vld [vmem:[%s4230_s20 + $0x2e0] ss:$8 sps:$4 sm:$0xff]  }
  0x7d   : > { %1151 = vmatprep.subr.bf16.mxu0 %v4058_v0  ;;  %3626 = vmatprep.subr.bf16.mxu1 %v4058_v0 }
  0x80   : > { %1152 = vmatpush1.bf16.msra.mxu0 %v3722_v13  ;;  %3642 = vmatpush1.bf16.msra.mxu1 %v3722_v13  ;;  %v3818_v13 = vld [vmem:[%s4230_s20 + $0xf4] ss:$8 sps:$4 sm:$0xff]  }
  0x81   : > { %1153 = vmatprep.subr.bf16.mxu0 %v4058_v0  ;;  %3627 = vmatprep.subr.bf16.mxu1 %v4058_v0 }
  0x84   : > { %1154 = vmatpush1.bf16.msra.mxu0 %v3723_v14  ;;  %3643 = vmatpush1.bf16.msra.mxu1 %v3723_v14  ;;  %v3820_v14 = vld [vmem:[%s4230_s20 + $0x2f4] ss:$8 sps:$4 sm:$0xff]  }
  0x85   : > { %1155 = vmatprep.subr.bf16.mxu0 %v4058_v0  ;;  %3628 = vmatprep.subr.bf16.mxu1 %v4058_v0 }
  0x88   : > { %1156 = vmatpush1.bf16.msra.mxu0 %v3724_v15  ;;  %3644 = vmatpush1.bf16.msra.mxu1 %v3724_v15  ;;  %v3822_v15 = vld [vmem:[%s4230_s20 + $0xf0] ss:$8 sps:$4 sm:$0xff]  }
  0x89   : > { %1157 = vmatprep.subr.bf16.mxu0 %v4058_v0  ;;  %3629 = vmatprep.subr.bf16.mxu1 %v4058_v0 }
  0x8c   : > { %1158 = vmatpush1.bf16.msra.mxu0 %v3725_v16  ;;  %3645 = vmatpush1.bf16.msra.mxu1 %v3725_v16  ;;  %v3823_v16 = vld [vmem:[%s4230_s20 + $0x2f0] ss:$8 sps:$4 sm:$0xff]  }
  0x8d   : > { %1159 = vmatprep.subr.bf16.mxu0 %v4058_v0  ;;  %3630 = vmatprep.subr.bf16.mxu1 %v4058_v0 }
  0x90   : > { %1160 = vmatpush1.bf16.msra.mxu0 %v3726_v17  ;;  %3646 = vmatpush1.bf16.msra.mxu1 %v3726_v17  ;;  %v3824_v17 = vld [vmem:[%s4230_s20 + $0x104] ss:$8 sps:$4 sm:$0xff]  }
  0x91   : > { %1161 = vmatprep.subr.bf16.mxu0 %v4058_v0  ;;  %3631 = vmatprep.subr.bf16.mxu1 %v4058_v0  ;;  %v3799_v0 = vld [vmem:[%s4230_s20 + $0x2b0] ss:$8 sps:$4 sm:$0xff]  }
  0x94   : > { %1162 = vmatpush1.bf16.msra.mxu0 %v3727_v18  ;;  %3647 = vmatpush1.bf16.msra.mxu1 %v3727_v18  ;;  %v3826_v18 = vld [vmem:[%s4230_s20 + $0x304] ss:$8 sps:$4 sm:$0xff]  }
  0x97   : > { %1164 = vmatmul.mubr.bf16.vlgmr.msra.gmra.mrb[0].mxu0 %v3728_v19  ;;  %1420 = vmatmul.mubr.bf16.vlgmr.msra.gmra.mrb[0].mxu1 %v3731_v20  ;;  %v3828_v19 = vld [vmem:[%s4230_s20 + $0x100] ss:$8 sps:$4 sm:$0xff]  }
  0x98   : > { %1171 = vmatprep.mubr.bf16.mxu0 %v3734_v21  ;;  %1427 = vmatprep.mubr.bf16.mxu1 %v3736_v22  ;;  %v3829_v20 = vld [vmem:[%s4230_s20 + $0x300] ss:$8 sps:$4 sm:$0xff]   ;;  %v3830_v21 = vld [vmem:[%s4230_s20 + $0x114] ss:$8 sps:$4 sm:$0xff]  }
  0x99   : > { %v3832_v22 = vld [vmem:[%s4230_s20 + $0x314] ss:$8 sps:$4 sm:$0xff]  }
  0x9f   : > { %1172 = vmatmul.mubr.bf16.gmra.mrb[4].mxu0 %v3738_v23  ;;  %1428 = vmatmul.mubr.bf16.gmra.mrb[4].mxu1 %v3739_v24  ;;  %v3834_v23 = vld [vmem:[%s4230_s20 + $0x110] ss:$8 sps:$4 sm:$0xff]  }
  0xa0   : > { %1179 = vmatprep.mubr.bf16.mxu0 %v3740_v25  ;;  %1435 = vmatprep.mubr.bf16.mxu1 %v3742_v26  ;;  %v3835_v24 = vld [vmem:[%s4230_s20 + $0x310] ss:$8 sps:$4 sm:$0xff]   ;;  %v3836_v25 = vld [vmem:[%s4230_s20 + $0x124] ss:$8 sps:$4 sm:$0xff]  }
  0xa1   : > { %v3838_v26 = vld [vmem:[%s4230_s20 + $0x324] ss:$8 sps:$4 sm:$0xff]  }
  0xa7   : > { %1180 = vmatmul.mubr.bf16.gmra.mrb[8].mxu0 %v3744_v27  ;;  %1436 = vmatmul.mubr.bf16.gmra.mrb[8].mxu1 %v3745_v28  ;;  %v3840_v27 = vld [vmem:[%s4230_s20 + $0x120] ss:$8 sps:$4 sm:$0xff]  }
  0xa8   : > { %1187 = vmatprep.mubr.bf16.mxu0 %v3746_v29  ;;  %1443 = vmatprep.mubr.bf16.mxu1 %v3748_v30  ;;  %v3841_v28 = vld [vmem:[%s4230_s20 + $0x320] ss:$8 sps:$4 sm:$0xff]   ;;  %v3842_v29 = vld [vmem:[%s4230_s20 + $0x134] ss:$8 sps:$4 sm:$0xff]  }
  0xa9   : > { %v3844_v30 = vld [vmem:[%s4230_s20 + $0x334] ss:$8 sps:$4 sm:$0xff]  }
  0xaf   : > { %1188 = vmatmul.mubr.bf16.gmra.mrb[12].mxu0 %v3750_v31  ;;  %1444 = vmatmul.mubr.bf16.gmra.mrb[12].mxu1 %v3751_v32  ;;  %v3846_v31 = vld [vmem:[%s4230_s20 + $0x130] ss:$8 sps:$4 sm:$0xff]  }
  0xb0   : > { %1195 = vmatprep.mubr.bf16.mxu0 %v3752_v33  ;;  %1451 = vmatprep.mubr.bf16.mxu1 %v3754_v34  ;;  %v3847_v32 = vld [vmem:[%s4230_s20 + $0x330] ss:$8 sps:$4 sm:$0xff]   ;;  %v3848_v33 = vld [vmem:[%s4230_s20 + $0x144] ss:$8 sps:$4 sm:$0xff]  }
  0xb1   : > { %v3850_v34 = vld [vmem:[%s4230_s20 + $0x344] ss:$8 sps:$4 sm:$0xff]  }
  0xb7   : > { %1196 = vmatmul.mubr.bf16.gmra.mrb[16].mxu0 %v3756_v35  ;;  %1452 = vmatmul.mubr.bf16.gmra.mrb[16].mxu1 %v3757_v36  ;;  %v3852_v35 = vld [vmem:[%s4230_s20 + $0x140] ss:$8 sps:$4 sm:$0xff]  }
  0xb8   : > { %1203 = vmatprep.mubr.bf16.mxu0 %v3758_v37  ;;  %1459 = vmatprep.mubr.bf16.mxu1 %v3760_v38  ;;  %v3853_v36 = vld [vmem:[%s4230_s20 + $0x340] ss:$8 sps:$4 sm:$0xff]   ;;  %v3854_v37 = vld [vmem:[%s4230_s20 + $0x154] ss:$8 sps:$4 sm:$0xff]  }
  0xb9   : > { %v3856_v38 = vld [vmem:[%s4230_s20 + $0x354] ss:$8 sps:$4 sm:$0xff]  }
  0xbf   : > { %1204 = vmatmul.mubr.bf16.gmra.mrb[20].mxu0 %v3762_v39  ;;  %1460 = vmatmul.mubr.bf16.gmra.mrb[20].mxu1 %v3763_v40  ;;  %v3858_v39 = vld [vmem:[%s4230_s20 + $0x150] ss:$8 sps:$4 sm:$0xff]  }
  0xc0   : > { %1211 = vmatprep.mubr.bf16.mxu0 %v3764_v41  ;;  %1467 = vmatprep.mubr.bf16.mxu1 %v3766_v42  ;;  %v3859_v40 = vld [vmem:[%s4230_s20 + $0x350] ss:$8 sps:$4 sm:$0xff]   ;;  %v3860_v41 = vld [vmem:[%s4230_s20 + $0x164] ss:$8 sps:$4 sm:$0xff]  }
  0xc1   : > { %v3862_v42 = vld [vmem:[%s4230_s20 + $0x364] ss:$8 sps:$4 sm:$0xff]  }
  0xc7   : > { %1212 = vmatmul.mubr.bf16.gmra.mrb[24].mxu0 %v3768_v43  ;;  %1468 = vmatmul.mubr.bf16.gmra.mrb[24].mxu1 %v3769_v44  ;;  %v3864_v43 = vld [vmem:[%s4230_s20 + $0x160] ss:$8 sps:$4 sm:$0xff]  }
  0xc8   : > { %1219 = vmatprep.mubr.bf16.mxu0 %v3770_v45  ;;  %1475 = vmatprep.mubr.bf16.mxu1 %v3772_v46  ;;  %v3865_v44 = vld [vmem:[%s4230_s20 + $0x360] ss:$8 sps:$4 sm:$0xff]   ;;  %v3866_v45 = vld [vmem:[%s4230_s20 + $0x174] ss:$8 sps:$4 sm:$0xff]  }
  0xc9   : > { %v3868_v46 = vld [vmem:[%s4230_s20 + $0x374] ss:$8 sps:$4 sm:$0xff]  }
  0xcf   : > { %1220 = vmatmul.mubr.bf16.gmra.mrb[28].mxu0 %v3774_v47  ;;  %1476 = vmatmul.mubr.bf16.gmra.mrb[28].mxu1 %v3775_v48  ;;  %v3870_v47 = vld [vmem:[%s4230_s20 + $0x170] ss:$8 sps:$4 sm:$0xff]  }
  0xd0   : > { %1227 = vmatprep.mubr.bf16.mxu0 %v3776_v49  ;;  %1483 = vmatprep.mubr.bf16.mxu1 %v3778_v50  ;;  %v3871_v48 = vld [vmem:[%s4230_s20 + $0x370] ss:$8 sps:$4 sm:$0xff]   ;;  %v3872_v49 = vld [vmem:[%s4230_s20 + $0x184] ss:$8 sps:$4 sm:$0xff]  }
  0xd1   : > { %v3874_v50 = vld [vmem:[%s4230_s20 + $0x384] ss:$8 sps:$4 sm:$0xff]  }
  0xd7   : > { %1228 = vmatmul.mubr.bf16.gmra.mrb[32].mxu0 %v3780_v51  ;;  %1484 = vmatmul.mubr.bf16.gmra.mrb[32].mxu1 %v3781_v52  ;;  %v3876_v51 = vld [vmem:[%s4230_s20 + $0x180] ss:$8 sps:$4 sm:$0xff]  }
  0xd8   : > { %1235 = vmatprep.mubr.bf16.mxu0 %v3782_v53  ;;  %1491 = vmatprep.mubr.bf16.mxu1 %v3784_v54  ;;  %v3877_v52 = vld [vmem:[%s4230_s20 + $0x380] ss:$8 sps:$4 sm:$0xff]   ;;  %v3878_v53 = vld [vmem:[%s4230_s20 + $0x194] ss:$8 sps:$4 sm:$0xff]  }
  0xd9   : > { %v3880_v54 = vld [vmem:[%s4230_s20 + $0x394] ss:$8 sps:$4 sm:$0xff]  }
  0xdf   : > { %1236 = vmatmul.mubr.bf16.gmra.mrb[36].mxu0 %v3786_v55  ;;  %1492 = vmatmul.mubr.bf16.gmra.mrb[36].mxu1 %v3787_v56  ;;  %v3882_v55 = vld [vmem:[%s4230_s20 + $0x190] ss:$8 sps:$4 sm:$0xff]  }
  0xe0   : > { %1243 = vmatprep.mubr.bf16.mxu0 %v3788_v57  ;;  %1499 = vmatprep.mubr.bf16.mxu1 %v3790_v58  ;;  %v3883_v56 = vld [vmem:[%s4230_s20 + $0x390] ss:$8 sps:$4 sm:$0xff]   ;;  %v3884_v57 = vld [vmem:[%s4230_s20 + $0x1a4] ss:$8 sps:$4 sm:$0xff]  }
  0xe1   : > { %v3886_v58 = vld [vmem:[%s4230_s20 + $0x3a4] ss:$8 sps:$4 sm:$0xff]  }
  0xe7   : > { %1244 = vmatmul.mubr.bf16.gmra.mrb[40].mxu0 %v3792_v59  ;;  %1500 = vmatmul.mubr.bf16.gmra.mrb[40].mxu1 %v3793_v60  ;;  %v3888_v59 = vld [vmem:[%s4230_s20 + $0x1a0] ss:$8 sps:$4 sm:$0xff]  }
  0xe8   : > { %1251 = vmatprep.mubr.bf16.mxu0 %v3794_v61  ;;  %1507 = vmatprep.mubr.bf16.mxu1 %v3796_v62  ;;  %v3889_v60 = vld [vmem:[%s4230_s20 + $0x3a0] ss:$8 sps:$4 sm:$0xff]   ;;  %v3890_v61 = vld [vmem:[%s4230_s20 + $0x1b4] ss:$8 sps:$4 sm:$0xff]  }
  0xe9   : > { %v3892_v62 = vld [vmem:[%s4230_s20 + $0x3b4] ss:$8 sps:$4 sm:$0xff]  }
  0xef   : > { %1252 = vmatmul.mubr.bf16.gmra.mrb[44].mxu0 %v3798_v63  ;;  %1508 = vmatmul.mubr.bf16.gmra.mrb[44].mxu1 %v3799_v0  ;;  %v4385_v63 = vld [vmem:[%s4796_s2] ss:$0 sm:$0xff] }
  0xf0   : > { %1259 = vmatprep.mubr.bf16.mxu0 %v3800_v1  ;;  %1515 = vmatprep.mubr.bf16.mxu1 %v3802_v2  ;;  %v4390_v1 = vld [vmem:[%s4797_s3] ss:$0 sm:$0xff] }
  0xf7   : > { %1260 = vmatmul.mubr.bf16.gmra.mrb[48].mxu0 %v3804_v3  ;;  %1516 = vmatmul.mubr.bf16.gmra.mrb[48].mxu1 %v3805_v4 }
  0xf8   : > { %1267 = vmatprep.mubr.bf16.mxu0 %v3806_v5  ;;  %1523 = vmatprep.mubr.bf16.mxu1 %v3808_v6 }
  0xff   : > { %1268 = vmatmul.mubr.bf16.gmra.mrb[52].mxu0 %v3810_v7  ;;  %1524 = vmatmul.mubr.bf16.gmra.mrb[52].mxu1 %v3811_v8  ;;  %v3894_v7 = vld [vmem:[%s4230_s20 + $0x1b0] ss:$8 sps:$4 sm:$0xff]  }
 0x100   : > { %1275 = vmatprep.mubr.bf16.mxu0 %v3812_v9  ;;  %1531 = vmatprep.mubr.bf16.mxu1 %v3814_v10  ;;  %v3895_v8 = vld [vmem:[%s4230_s20 + $0x3b0] ss:$8 sps:$4 sm:$0xff]  }
 0x107   : > { %1276 = vmatmul.mubr.bf16.gmra.mrb[56].mxu0 %v3816_v11  ;;  %1532 = vmatmul.mubr.bf16.gmra.mrb[56].mxu1 %v3817_v12  ;;  %v3896_v11 = vld [vmem:[%s4230_s20 + $0x1c4] ss:$8 sps:$4 sm:$0xff]  }
 0x108   : > { %1283 = vmatprep.mubr.bf16.mxu0 %v3818_v13  ;;  %1539 = vmatprep.mubr.bf16.mxu1 %v3820_v14  ;;  %v3898_v12 = vld [vmem:[%s4230_s20 + $0x3c4] ss:$8 sps:$4 sm:$0xff]  }
 0x10f   : > { %1284 = vmatmul.mubr.bf16.gmra.mrb[60].mxu0 %v3822_v15  ;;  %1540 = vmatmul.mubr.bf16.gmra.mrb[60].mxu1 %v3823_v16 }
 0x110   : > { %1291 = vmatprep.mubr.bf16.mxu0 %v3824_v17  ;;  %1547 = vmatprep.mubr.bf16.mxu1 %v3826_v18 }
 0x117   : > { %1292 = vmatmul.mubr.bf16.gmra.mrb[64].mxu0 %v3828_v19  ;;  %1548 = vmatmul.mubr.bf16.gmra.mrb[64].mxu1 %v3829_v20 }
 0x118   : > { %1299 = vmatprep.mubr.bf16.mxu0 %v3830_v21  ;;  %1555 = vmatprep.mubr.bf16.mxu1 %v3832_v22 }
 0x11f   : > { %1300 = vmatmul.mubr.bf16.gmra.mrb[68].mxu0 %v3834_v23  ;;  %1556 = vmatmul.mubr.bf16.gmra.mrb[68].mxu1 %v3835_v24 }
 0x120   : > { %1307 = vmatprep.mubr.bf16.mxu0 %v3836_v25  ;;  %1563 = vmatprep.mubr.bf16.mxu1 %v3838_v26 }
 0x127   : > { %1308 = vmatmul.mubr.bf16.gmra.mrb[72].mxu0 %v3840_v27  ;;  %1564 = vmatmul.mubr.bf16.gmra.mrb[72].mxu1 %v3841_v28 }
 0x128   : > { %1315 = vmatprep.mubr.bf16.mxu0 %v3842_v29  ;;  %1571 = vmatprep.mubr.bf16.mxu1 %v3844_v30 }
 0x12f   : > { %1316 = vmatmul.mubr.bf16.gmra.mrb[76].mxu0 %v3846_v31  ;;  %1572 = vmatmul.mubr.bf16.gmra.mrb[76].mxu1 %v3847_v32 }
 0x130   : > { %1323 = vmatprep.mubr.bf16.mxu0 %v3848_v33  ;;  %1579 = vmatprep.mubr.bf16.mxu1 %v3850_v34  ;;  %v3900_v33 = vld [vmem:[%s4230_s20 + $0x1c0] ss:$8 sps:$4 sm:$0xff]  }
 0x131   : > { %v3901_v34 = vld [vmem:[%s4230_s20 + $0x3c0] ss:$8 sps:$4 sm:$0xff]  }
 0x137   : > { %1324 = vmatmul.mubr.bf16.gmra.mrb[80].mxu0 %v3852_v35  ;;  %1580 = vmatmul.mubr.bf16.gmra.mrb[80].mxu1 %v3853_v36 }
 0x138   : > { %1331 = vmatprep.mubr.bf16.mxu0 %v3854_v37  ;;  %1587 = vmatprep.mubr.bf16.mxu1 %v3856_v38  ;;  %v3902_v37 = vld [vmem:[%s4230_s20 + $0x1d4] ss:$8 sps:$4 sm:$0xff]  }
 0x139   : > { %v3904_v38 = vld [vmem:[%s4230_s20 + $0x3d4] ss:$8 sps:$4 sm:$0xff]  }
 0x13f   : > { %1332 = vmatmul.mubr.bf16.gmra.mrb[84].mxu0 %v3858_v39  ;;  %1588 = vmatmul.mubr.bf16.gmra.mrb[84].mxu1 %v3859_v40 }
 0x140   : > { %1339 = vmatprep.mubr.bf16.mxu0 %v3860_v41  ;;  %1595 = vmatprep.mubr.bf16.mxu1 %v3862_v42 }
 0x147   : > { %1340 = vmatmul.mubr.bf16.gmra.mrb[88].mxu0 %v3864_v43  ;;  %1596 = vmatmul.mubr.bf16.gmra.mrb[88].mxu1 %v3865_v44 }
 0x148   : > { %1347 = vmatprep.mubr.bf16.mxu0 %v3866_v45  ;;  %1603 = vmatprep.mubr.bf16.mxu1 %v3868_v46 }
 0x14f   : > { %1348 = vmatmul.mubr.bf16.gmra.mrb[92].mxu0 %v3870_v47  ;;  %1604 = vmatmul.mubr.bf16.gmra.mrb[92].mxu1 %v3871_v48 }
 0x150   : > { %1355 = vmatprep.mubr.bf16.mxu0 %v3872_v49  ;;  %1611 = vmatprep.mubr.bf16.mxu1 %v3874_v50 }
 0x157   : > { %1356 = vmatmul.mubr.bf16.gmra.mrb[96].mxu0 %v3876_v51  ;;  %1612 = vmatmul.mubr.bf16.gmra.mrb[96].mxu1 %v3877_v52 }
 0x158   : > { %1363 = vmatprep.mubr.bf16.mxu0 %v3878_v53  ;;  %1619 = vmatprep.mubr.bf16.mxu1 %v3880_v54 }
 0x15f   : > { %1364 = vmatmul.mubr.bf16.gmra.mrb[100].mxu0 %v3882_v55  ;;  %1620 = vmatmul.mubr.bf16.gmra.mrb[100].mxu1 %v3883_v56 }
 0x160   : > { %1371 = vmatprep.mubr.bf16.mxu0 %v3884_v57  ;;  %1627 = vmatprep.mubr.bf16.mxu1 %v3886_v58 }
 0x167   : > { %1372 = vmatmul.mubr.bf16.gmra.mrb[104].mxu0 %v3888_v59  ;;  %1628 = vmatmul.mubr.bf16.gmra.mrb[104].mxu1 %v3889_v60  ;;  %v3906_v59 = vld [vmem:[%s4230_s20 + $0x1d0] ss:$8 sps:$4 sm:$0xff]  }
 0x168   : > { %1379 = vmatprep.mubr.bf16.mxu0 %v3890_v61  ;;  %1635 = vmatprep.mubr.bf16.mxu1 %v3892_v62  ;;  %v3907_v60 = vld [vmem:[%s4230_s20 + $0x3d0] ss:$8 sps:$4 sm:$0xff]  }
 0x16a   : > { %v1165_v0 = vpop.f32.mrb[0].mxu0  ;;  %v1421_v2 = vpop.f32.mrb[0].mxu1 }
 0x16b   : > { %v1683_v3 = vmul.f32 %v4385_v63, %v1165_v0  ;;  %v1747_v4 = vmul.f32 %v4385_v63, %v1421_v2  ;;  %v1167_v5 = vpop.f32.mrb[1].mxu0  ;;  %v1423_v6 = vpop.f32.mrb[1].mxu1  ;;  %v3908_v0 = vld [vmem:[%s4230_s20 + $0x1e4] ss:$8 sps:$4 sm:$0xff]  }
 0x16c   : > { %v1168_v9 = vpop.f32.mrb[2].mxu0  ;;  %v1424_v10 = vpop.f32.mrb[2].mxu1  ;;  %v3910_v2 = vld [vmem:[%s4230_s20 + $0x3e4] ss:$8 sps:$4 sm:$0xff]  }
 0x16d   : > { %v1818_v13 = vadd.f32 %v4390_v1, %v1683_v3  ;;  %v1882_v14 = vadd.f32 %v4390_v1, %v1747_v4  ;;  %v1684_v15 = vmul.f32 %v4385_v63, %v1168_v9  ;;  %v1748_v16 = vmul.f32 %v4385_v63, %v1424_v10  ;;  %v1170_v17 = vpop.f32.mrb[3].mxu0  ;;  %v1426_v18 = vpop.f32.mrb[3].mxu1 }
 0x16f   : > { %v1819_v19 = vadd.f32 %v4390_v1, %v1684_v15  ;;  %v1883_v20 = vadd.f32 %v4390_v1, %v1748_v16  ;;  %1380 = vmatmul.mubr.bf16.gmra.mrb[108].mxu0 %v3894_v7  ;;  %1636 = vmatmul.mubr.bf16.gmra.mrb[108].mxu1 %v3895_v8  ;;  %v1946_v21 = vmax.f32 %v1818_v13, 0.0  ;;  %v2010_v22 = vmax.f32 %v1882_v14, 0.0 }
 0x170   : > { %1387 = vmatprep.mubr.bf16.mxu0 %v3896_v11  ;;  %1643 = vmatprep.mubr.bf16.mxu1 %v3898_v12 }
 0x171   : > { %v1947_v23 = vmax.f32 %v1819_v19, 0.0  ;;  %v2011_v24 = vmax.f32 %v1883_v20, 0.0 }
 0x172   : > { %v1173_v25 = vpop.f32.mrb[4].mxu0  ;;  %v1429_v26 = vpop.f32.mrb[4].mxu1 }
 0x173   : > { %v3236_v27 = vpack.c.bf16 %v1947_v23, %v1946_v21  ;;  %v3396_v28 = vpack.c.bf16 %v2011_v24, %v2010_v22  ;;  %v1685_v29 = vmul.f32 %v4385_v63, %v1173_v25  ;;  %v1749_v30 = vmul.f32 %v4385_v63, %v1429_v26  ;;  %v1175_v31 = vpop.f32.mrb[5].mxu0  ;;  %v1431_v32 = vpop.f32.mrb[5].mxu1  ;;  %v3912_v23 = vld [vmem:[%s4230_s20 + $0x1e0] ss:$8 sps:$4 sm:$0xff]  }
 0x174   : > { %v1176_v35 = vpop.f32.mrb[6].mxu0  ;;  %v1432_v36 = vpop.f32.mrb[6].mxu1  ;;  %v3913_v24 = vld [vmem:[%s4230_s20 + $0x3e0] ss:$8 sps:$4 sm:$0xff]  }
 0x175   : > { %3237 = vst [vmem:[%s4411_s10] sm:$0xff] %v3236_v27   ;;  %3584 = vst [vmem:[%s4411_s10 + $0x100] sm:$0xff] %v3396_v28   ;;  %v1820_v39 = vadd.f32 %v4390_v1, %v1685_v29  ;;  %v1884_v40 = vadd.f32 %v4390_v1, %v1749_v30  ;;  %v1686_v41 = vmul.f32 %v4385_v63, %v1176_v35  ;;  %v1178_v43 = vpop.f32.mrb[7].mxu0  ;;  %v1434_v44 = vpop.f32.mrb[7].mxu1  ;;  %v3914_v27 = vld [vmem:[%s4230_s20 + $0x1f4] ss:$8 sps:$4 sm:$0xff]  }
 0x176   : > { %v1750_v42 = vmul.f32 %v4385_v63, %v1432_v36  ;;  %v3916_v28 = vld [vmem:[%s4230_s20 + $0x3f4] ss:$8 sps:$4 sm:$0xff]  }
 0x177   : > { %v1821_v45 = vadd.f32 %v4390_v1, %v1686_v41  ;;  %1388 = vmatmul.mubr.bf16.gmra.mrb[112].mxu0 %v3900_v33  ;;  %1644 = vmatmul.mubr.bf16.gmra.mrb[112].mxu1 %v3901_v34  ;;  %v1948_v47 = vmax.f32 %v1820_v39, 0.0  ;;  %v2012_v48 = vmax.f32 %v1884_v40, 0.0 }
 0x178   : > { %v1885_v46 = vadd.f32 %v4390_v1, %v1750_v42  ;;  %1395 = vmatprep.mubr.bf16.mxu0 %v3902_v37  ;;  %1651 = vmatprep.mubr.bf16.mxu1 %v3904_v38 }
 0x179   : > { %v1949_v49 = vmax.f32 %v1821_v45, 0.0 }
 0x17a   : > { %v2013_v50 = vmax.f32 %v1885_v46, 0.0  ;;  %v1181_v51 = vpop.f32.mrb[8].mxu0  ;;  %v1437_v52 = vpop.f32.mrb[8].mxu1 }
 0x17b   : > { %v3241_v53 = vpack.c.bf16 %v1949_v49, %v1948_v47  ;;  %v1687_v55 = vmul.f32 %v4385_v63, %v1181_v51  ;;  %v1751_v56 = vmul.f32 %v4385_v63, %v1437_v52  ;;  %v1183_v57 = vpop.f32.mrb[9].mxu0  ;;  %v1439_v58 = vpop.f32.mrb[9].mxu1  ;;  %v3918_v49 = vld [vmem:[%s4230_s20 + $0x1f0] ss:$8 sps:$4 sm:$0xff]  }
 0x17c   : > { %v3401_v54 = vpack.c.bf16 %v2013_v50, %v2012_v48  ;;  %v1184_v61 = vpop.f32.mrb[10].mxu0  ;;  %v1440_v62 = vpop.f32.mrb[10].mxu1  ;;  %v3919_v50 = vld [vmem:[%s4230_s20 + $0x3f0] ss:$8 sps:$4 sm:$0xff]   ;;  %s3980_s20 = scalar_lea.vmem %s4748_s25, 8192 }
 0x17d   : > { %3553 = vst [vmem:[%s4411_s10 + $0x8] sm:$0xff] %v3241_v53   ;;  %v1822_v3 = vadd.f32 %v4390_v1, %v1687_v55  ;;  %v1886_v4 = vadd.f32 %v4390_v1, %v1751_v56  ;;  %v1688_v5 = vmul.f32 %v4385_v63, %v1184_v61  ;;  %v1752_v6 = vmul.f32 %v4385_v63, %v1440_v62  ;;  %v1186_v7 = vpop.f32.mrb[11].mxu0  ;;  %v1442_v8 = vpop.f32.mrb[11].mxu1  ;;  %p3981_p4 = scmp.ne.s32.totalorder %s4748_s25, %s3980_s20  ;;  %p3988_p13 = scmp.lt.s32.totalorder %s3986_s9, %s3980_s20 }
 0x17e   : > { %3585 = vst [vmem:[%s4411_s10 + $0x108] sm:$0xff] %v3401_v54  }
 0x17f   : > { %v1823_v9 = vadd.f32 %v4390_v1, %v1688_v5  ;;  %v1887_v10 = vadd.f32 %v4390_v1, %v1752_v6  ;;  %1396 = vmatmul.mubr.bf16.gmra.mrb[116].mxu0 %v3906_v59  ;;  %1652 = vmatmul.mubr.bf16.gmra.mrb[116].mxu1 %v3907_v60  ;;  %v1950_v11 = vmax.f32 %v1822_v3, 0.0  ;;  %v2014_v12 = vmax.f32 %v1886_v4, 0.0  ;;  %p3982_p6 = pnand %p3981_p4, %p4178_p12  ;;  %p3989_p3 = por %p3988_p13, %p3987_p10 }
 0x180   : > { %1403 = vmatprep.mubr.bf16.mxu0 %v3908_v0  ;;  %1659 = vmatprep.mubr.bf16.mxu1 %v3910_v2 }
 0x181   : > { %v1951_v13 = vmax.f32 %v1823_v9, 0.0  ;;  %v2015_v14 = vmax.f32 %v1887_v10, 0.0  ;;  %p3983_p8 = pneg %p3982_p6 }
 0x182   : > { %v1189_v15 = vpop.f32.mrb[12].mxu0  ;;  %v1445_v16 = vpop.f32.mrb[12].mxu1 }
 0x183   : > { %v3246_v17 = vpack.c.bf16 %v1951_v13, %v1950_v11  ;;  %v3406_v18 = vpack.c.bf16 %v2015_v14, %v2014_v12  ;;  %v1689_v19 = vmul.f32 %v4385_v63, %v1189_v15  ;;  %v1753_v20 = vmul.f32 %v4385_v63, %v1445_v16  ;;  %v1191_v21 = vpop.f32.mrb[13].mxu0  ;;  %v1447_v22 = vpop.f32.mrb[13].mxu1  ;;  %p3990_p7 = pnand %p3989_p3, %p3983_p8 }
 0x184   : > { %v1192_v25 = vpop.f32.mrb[14].mxu0  ;;  %v1448_v26 = vpop.f32.mrb[14].mxu1 }
 0x185   : > { %3554 = vst [vmem:[%s4411_s10 + $0x10] sm:$0xff] %v3246_v17   ;;  %3586 = vst [vmem:[%s4411_s10 + $0x110] sm:$0xff] %v3406_v18   ;;  %v1824_v29 = vadd.f32 %v4390_v1, %v1689_v19  ;;  %v1888_v30 = vadd.f32 %v4390_v1, %v1753_v20  ;;  %v1690_v31 = vmul.f32 %v4385_v63, %v1192_v25  ;;  %v1194_v33 = vpop.f32.mrb[15].mxu0  ;;  %v1450_v34 = vpop.f32.mrb[15].mxu1 }
 0x186   : > { %v1754_v32 = vmul.f32 %v4385_v63, %v1448_v26 }
 0x187   : > { %v1825_v35 = vadd.f32 %v4390_v1, %v1690_v31  ;;  %1404 = vmatmul.mubr.bf16.gmra.mrb[120].mxu0 %v3912_v23  ;;  %1660 = vmatmul.mubr.bf16.gmra.mrb[120].mxu1 %v3913_v24  ;;  %v1952_v37 = vmax.f32 %v1824_v29, 0.0  ;;  %v2016_v38 = vmax.f32 %v1888_v30, 0.0 }
 0x188   : > { %v1889_v36 = vadd.f32 %v4390_v1, %v1754_v32  ;;  %1411 = vmatprep.mubr.bf16.mxu0 %v3914_v27  ;;  %1667 = vmatprep.mubr.bf16.mxu1 %v3916_v28 }
 0x189   : > { %v1953_v39 = vmax.f32 %v1825_v35, 0.0 }
 0x18a   : > { %v2017_v40 = vmax.f32 %v1889_v36, 0.0  ;;  %v1197_v41 = vpop.f32.mrb[16].mxu0  ;;  %v1453_v42 = vpop.f32.mrb[16].mxu1 }
 0x18b   : > { %v3251_v43 = vpack.c.bf16 %v1953_v39, %v1952_v37  ;;  %v1691_v45 = vmul.f32 %v4385_v63, %v1197_v41  ;;  %v1755_v46 = vmul.f32 %v4385_v63, %v1453_v42  ;;  %v1199_v47 = vpop.f32.mrb[17].mxu0  ;;  %v1455_v48 = vpop.f32.mrb[17].mxu1 }
 0x18c   : > { %v3411_v44 = vpack.c.bf16 %v2017_v40, %v2016_v38  ;;  %v1200_v51 = vpop.f32.mrb[18].mxu0  ;;  %v1456_v52 = vpop.f32.mrb[18].mxu1 }
 0x18d   : > { %3555 = vst [vmem:[%s4411_s10 + $0x18] sm:$0xff] %v3251_v43   ;;  %v1826_v53 = vadd.f32 %v4390_v1, %v1691_v45  ;;  %v1890_v54 = vadd.f32 %v4390_v1, %v1755_v46  ;;  %v1692_v55 = vmul.f32 %v4385_v63, %v1200_v51  ;;  %v1756_v56 = vmul.f32 %v4385_v63, %v1456_v52  ;;  %v1202_v57 = vpop.f32.mrb[19].mxu0  ;;  %v1458_v58 = vpop.f32.mrb[19].mxu1 }
 0x18e   : > { %3587 = vst [vmem:[%s4411_s10 + $0x118] sm:$0xff] %v3411_v44  }
 0x18f   : > { %v1827_v59 = vadd.f32 %v4390_v1, %v1692_v55  ;;  %v1891_v60 = vadd.f32 %v4390_v1, %v1756_v56  ;;  %1412 = vmatmul.mubr.bf16.gmra.mrb[124].mxu0 %v3918_v49  ;;  %1668 = vmatmul.mubr.bf16.gmra.mrb[124].mxu1 %v3919_v50  ;;  %v1954_v61 = vmax.f32 %v1826_v53, 0.0  ;;  %v2018_v62 = vmax.f32 %v1890_v54, 0.0 }
 0x191   : > { %v1955_v0 = vmax.f32 %v1827_v59, 0.0  ;;  %v2019_v2 = vmax.f32 %v1891_v60, 0.0 }
 0x192   : > { %v1205_v3 = vpop.f32.mrb[20].mxu0  ;;  %v1461_v4 = vpop.f32.mrb[20].mxu1 }
 0x193   : > { %v3256_v5 = vpack.c.bf16 %v1955_v0, %v1954_v61  ;;  %v3416_v6 = vpack.c.bf16 %v2019_v2, %v2018_v62  ;;  %v1693_v7 = vmul.f32 %v4385_v63, %v1205_v3  ;;  %v1757_v8 = vmul.f32 %v4385_v63, %v1461_v4  ;;  %v1207_v9 = vpop.f32.mrb[21].mxu0  ;;  %v1463_v10 = vpop.f32.mrb[21].mxu1 }
 0x194   : > { %v1208_v11 = vpop.f32.mrb[22].mxu0  ;;  %v1464_v12 = vpop.f32.mrb[22].mxu1 }
 0x195   : > { %3556 = vst [vmem:[%s4411_s10 + $0x20] sm:$0xff] %v3256_v5   ;;  %3588 = vst [vmem:[%s4411_s10 + $0x120] sm:$0xff] %v3416_v6   ;;  %v1828_v13 = vadd.f32 %v4390_v1, %v1693_v7  ;;  %v1892_v14 = vadd.f32 %v4390_v1, %v1757_v8  ;;  %v1694_v15 = vmul.f32 %v4385_v63, %v1208_v11  ;;  %v1210_v17 = vpop.f32.mrb[23].mxu0  ;;  %v1466_v18 = vpop.f32.mrb[23].mxu1 }
 0x196   : > { %v1758_v16 = vmul.f32 %v4385_v63, %v1464_v12 }
 0x197   : > { %v1829_v19 = vadd.f32 %v4390_v1, %v1694_v15  ;;  %v1956_v21 = vmax.f32 %v1828_v13, 0.0  ;;  %v2020_v22 = vmax.f32 %v1892_v14, 0.0 }
 0x198   : > { %v1893_v20 = vadd.f32 %v4390_v1, %v1758_v16 }
 0x199   : > { %v1957_v23 = vmax.f32 %v1829_v19, 0.0 }
 0x19a   : > { %v2021_v24 = vmax.f32 %v1893_v20, 0.0  ;;  %v1213_v25 = vpop.f32.mrb[24].mxu0  ;;  %v1469_v26 = vpop.f32.mrb[24].mxu1 }
 0x19b   : > { %v3261_v27 = vpack.c.bf16 %v1957_v23, %v1956_v21  ;;  %v1695_v29 = vmul.f32 %v4385_v63, %v1213_v25  ;;  %v1759_v30 = vmul.f32 %v4385_v63, %v1469_v26  ;;  %v1215_v31 = vpop.f32.mrb[25].mxu0  ;;  %v1471_v32 = vpop.f32.mrb[25].mxu1 }
 0x19c   : > { %v3421_v28 = vpack.c.bf16 %v2021_v24, %v2020_v22  ;;  %v1216_v33 = vpop.f32.mrb[26].mxu0  ;;  %v1472_v34 = vpop.f32.mrb[26].mxu1 }
 0x19d   : > { %3557 = vst [vmem:[%s4411_s10 + $0x28] sm:$0xff] %v3261_v27   ;;  %v1830_v35 = vadd.f32 %v4390_v1, %v1695_v29  ;;  %v1894_v36 = vadd.f32 %v4390_v1, %v1759_v30  ;;  %v1696_v37 = vmul.f32 %v4385_v63, %v1216_v33  ;;  %v1760_v38 = vmul.f32 %v4385_v63, %v1472_v34  ;;  %v1218_v39 = vpop.f32.mrb[27].mxu0  ;;  %v1474_v40 = vpop.f32.mrb[27].mxu1 }
 0x19e   : > { %3589 = vst [vmem:[%s4411_s10 + $0x128] sm:$0xff] %v3421_v28  }
 0x19f   : > { %v1831_v41 = vadd.f32 %v4390_v1, %v1696_v37  ;;  %v1895_v42 = vadd.f32 %v4390_v1, %v1760_v38  ;;  %v1958_v43 = vmax.f32 %v1830_v35, 0.0  ;;  %v2022_v44 = vmax.f32 %v1894_v36, 0.0 }
 0x1a1   : > { %v1959_v45 = vmax.f32 %v1831_v41, 0.0  ;;  %v2023_v46 = vmax.f32 %v1895_v42, 0.0 }
 0x1a2   : > { %v1221_v47 = vpop.f32.mrb[28].mxu0  ;;  %v1477_v48 = vpop.f32.mrb[28].mxu1 }
 0x1a3   : > { %v3266_v49 = vpack.c.bf16 %v1959_v45, %v1958_v43  ;;  %v3426_v50 = vpack.c.bf16 %v2023_v46, %v2022_v44  ;;  %v1697_v51 = vmul.f32 %v4385_v63, %v1221_v47  ;;  %v1761_v52 = vmul.f32 %v4385_v63, %v1477_v48  ;;  %v1223_v53 = vpop.f32.mrb[29].mxu0  ;;  %v1479_v54 = vpop.f32.mrb[29].mxu1 }
 0x1a4   : > { %v1224_v55 = vpop.f32.mrb[30].mxu0  ;;  %v1480_v56 = vpop.f32.mrb[30].mxu1 }
 0x1a5   : > { %3558 = vst [vmem:[%s4411_s10 + $0x30] sm:$0xff] %v3266_v49   ;;  %3590 = vst [vmem:[%s4411_s10 + $0x130] sm:$0xff] %v3426_v50   ;;  %v1832_v57 = vadd.f32 %v4390_v1, %v1697_v51  ;;  %v1896_v58 = vadd.f32 %v4390_v1, %v1761_v52  ;;  %v1698_v59 = vmul.f32 %v4385_v63, %v1224_v55  ;;  %v1226_v61 = vpop.f32.mrb[31].mxu0  ;;  %v1482_v62 = vpop.f32.mrb[31].mxu1 }
 0x1a6   : > { %v1762_v60 = vmul.f32 %v4385_v63, %v1480_v56 }
 0x1a7   : > { %v1833_v0 = vadd.f32 %v4390_v1, %v1698_v59  ;;  %v1960_v3 = vmax.f32 %v1832_v57, 0.0  ;;  %v2024_v4 = vmax.f32 %v1896_v58, 0.0 }
 0x1a8   : > { %v1897_v2 = vadd.f32 %v4390_v1, %v1762_v60 }
 0x1a9   : > { %v1961_v5 = vmax.f32 %v1833_v0, 0.0 }
 0x1aa   : > { %v2025_v6 = vmax.f32 %v1897_v2, 0.0  ;;  %v1229_v7 = vpop.f32.mrb[32].mxu0  ;;  %v1485_v8 = vpop.f32.mrb[32].mxu1 }
 0x1ab   : > { %v3271_v9 = vpack.c.bf16 %v1961_v5, %v1960_v3  ;;  %v1699_v11 = vmul.f32 %v4385_v63, %v1229_v7  ;;  %v1763_v12 = vmul.f32 %v4385_v63, %v1485_v8  ;;  %v1231_v13 = vpop.f32.mrb[33].mxu0  ;;  %v1487_v14 = vpop.f32.mrb[33].mxu1 }
 0x1ac   : > { %v3431_v10 = vpack.c.bf16 %v2025_v6, %v2024_v4  ;;  %v1232_v15 = vpop.f32.mrb[34].mxu0  ;;  %v1488_v16 = vpop.f32.mrb[34].mxu1 }
 0x1ad   : > { %3559 = vst [vmem:[%s4411_s10 + $0x38] sm:$0xff] %v3271_v9   ;;  %v1834_v17 = vadd.f32 %v4390_v1, %v1699_v11  ;;  %v1898_v18 = vadd.f32 %v4390_v1, %v1763_v12  ;;  %v1700_v19 = vmul.f32 %v4385_v63, %v1232_v15  ;;  %v1764_v20 = vmul.f32 %v4385_v63, %v1488_v16  ;;  %v1234_v21 = vpop.f32.mrb[35].mxu0  ;;  %v1490_v22 = vpop.f32.mrb[35].mxu1 }
 0x1ae   : > { %3591 = vst [vmem:[%s4411_s10 + $0x138] sm:$0xff] %v3431_v10  }
 0x1af   : > { %v1835_v23 = vadd.f32 %v4390_v1, %v1700_v19  ;;  %v1899_v24 = vadd.f32 %v4390_v1, %v1764_v20  ;;  %v1962_v25 = vmax.f32 %v1834_v17, 0.0  ;;  %v2026_v26 = vmax.f32 %v1898_v18, 0.0 }
 0x1b1   : > { %v1963_v27 = vmax.f32 %v1835_v23, 0.0  ;;  %v2027_v28 = vmax.f32 %v1899_v24, 0.0 }
 0x1b2   : > { %v1237_v29 = vpop.f32.mrb[36].mxu0  ;;  %v1493_v30 = vpop.f32.mrb[36].mxu1 }
 0x1b3   : > { %v3276_v31 = vpack.c.bf16 %v1963_v27, %v1962_v25  ;;  %v3436_v32 = vpack.c.bf16 %v2027_v28, %v2026_v26  ;;  %v1701_v33 = vmul.f32 %v4385_v63, %v1237_v29  ;;  %v1765_v34 = vmul.f32 %v4385_v63, %v1493_v30  ;;  %v1239_v35 = vpop.f32.mrb[37].mxu0  ;;  %v1495_v36 = vpop.f32.mrb[37].mxu1 }
 0x1b4   : > { %v1240_v37 = vpop.f32.mrb[38].mxu0  ;;  %v1496_v38 = vpop.f32.mrb[38].mxu1 }
 0x1b5   : > { %3560 = vst [vmem:[%s4411_s10 + $0x40] sm:$0xff] %v3276_v31   ;;  %3592 = vst [vmem:[%s4411_s10 + $0x140] sm:$0xff] %v3436_v32   ;;  %v1836_v39 = vadd.f32 %v4390_v1, %v1701_v33  ;;  %v1900_v40 = vadd.f32 %v4390_v1, %v1765_v34  ;;  %v1702_v41 = vmul.f32 %v4385_v63, %v1240_v37  ;;  %v1242_v43 = vpop.f32.mrb[39].mxu0  ;;  %v1498_v44 = vpop.f32.mrb[39].mxu1 }
 0x1b6   : > { %v1766_v42 = vmul.f32 %v4385_v63, %v1496_v38 }
 0x1b7   : > { %v1837_v45 = vadd.f32 %v4390_v1, %v1702_v41  ;;  %v1964_v47 = vmax.f32 %v1836_v39, 0.0  ;;  %v2028_v48 = vmax.f32 %v1900_v40, 0.0 }
 0x1b8   : > { %v1901_v46 = vadd.f32 %v4390_v1, %v1766_v42 }
 0x1b9   : > { %v1965_v49 = vmax.f32 %v1837_v45, 0.0 }
 0x1ba   : > { %v2029_v50 = vmax.f32 %v1901_v46, 0.0  ;;  %v1245_v51 = vpop.f32.mrb[40].mxu0  ;;  %v1501_v52 = vpop.f32.mrb[40].mxu1 }
 0x1bb   : > { %v3281_v53 = vpack.c.bf16 %v1965_v49, %v1964_v47  ;;  %v1703_v55 = vmul.f32 %v4385_v63, %v1245_v51  ;;  %v1767_v56 = vmul.f32 %v4385_v63, %v1501_v52  ;;  %v1247_v57 = vpop.f32.mrb[41].mxu0  ;;  %v1503_v58 = vpop.f32.mrb[41].mxu1 }
 0x1bc   : > { %v3441_v54 = vpack.c.bf16 %v2029_v50, %v2028_v48  ;;  %v1248_v59 = vpop.f32.mrb[42].mxu0  ;;  %v1504_v60 = vpop.f32.mrb[42].mxu1 }
 0x1bd   : > { %3561 = vst [vmem:[%s4411_s10 + $0x48] sm:$0xff] %v3281_v53   ;;  %v1838_v61 = vadd.f32 %v4390_v1, %v1703_v55  ;;  %v1902_v62 = vadd.f32 %v4390_v1, %v1767_v56  ;;  %v1704_v0 = vmul.f32 %v4385_v63, %v1248_v59  ;;  %v1768_v2 = vmul.f32 %v4385_v63, %v1504_v60  ;;  %v1250_v3 = vpop.f32.mrb[43].mxu0  ;;  %v1506_v4 = vpop.f32.mrb[43].mxu1 }
 0x1be   : > { %3593 = vst [vmem:[%s4411_s10 + $0x148] sm:$0xff] %v3441_v54  }
 0x1bf   : > { %v1839_v5 = vadd.f32 %v4390_v1, %v1704_v0  ;;  %v1903_v6 = vadd.f32 %v4390_v1, %v1768_v2  ;;  %v1966_v7 = vmax.f32 %v1838_v61, 0.0  ;;  %v2030_v8 = vmax.f32 %v1902_v62, 0.0 }
 0x1c1   : > { %v1967_v9 = vmax.f32 %v1839_v5, 0.0  ;;  %v2031_v10 = vmax.f32 %v1903_v6, 0.0 }
 0x1c2   : > { %v1253_v11 = vpop.f32.mrb[44].mxu0  ;;  %v1509_v12 = vpop.f32.mrb[44].mxu1 }
 0x1c3   : > { %v3286_v13 = vpack.c.bf16 %v1967_v9, %v1966_v7  ;;  %v3446_v14 = vpack.c.bf16 %v2031_v10, %v2030_v8  ;;  %v1705_v15 = vmul.f32 %v4385_v63, %v1253_v11  ;;  %v1769_v16 = vmul.f32 %v4385_v63, %v1509_v12  ;;  %v1255_v17 = vpop.f32.mrb[45].mxu0  ;;  %v1511_v18 = vpop.f32.mrb[45].mxu1 }
 0x1c4   : > { %v1256_v19 = vpop.f32.mrb[46].mxu0  ;;  %v1512_v20 = vpop.f32.mrb[46].mxu1 }
 0x1c5   : > { %3562 = vst [vmem:[%s4411_s10 + $0x50] sm:$0xff] %v3286_v13   ;;  %3594 = vst [vmem:[%s4411_s10 + $0x150] sm:$0xff] %v3446_v14   ;;  %v1840_v21 = vadd.f32 %v4390_v1, %v1705_v15  ;;  %v1904_v22 = vadd.f32 %v4390_v1, %v1769_v16  ;;  %v1706_v23 = vmul.f32 %v4385_v63, %v1256_v19  ;;  %v1258_v25 = vpop.f32.mrb[47].mxu0  ;;  %v1514_v26 = vpop.f32.mrb[47].mxu1 }
 0x1c6   : > { %v1770_v24 = vmul.f32 %v4385_v63, %v1512_v20 }
 0x1c7   : > { %v1841_v27 = vadd.f32 %v4390_v1, %v1706_v23  ;;  %v1968_v29 = vmax.f32 %v1840_v21, 0.0  ;;  %v2032_v30 = vmax.f32 %v1904_v22, 0.0 }
 0x1c8   : > { %v1905_v28 = vadd.f32 %v4390_v1, %v1770_v24 }
 0x1c9   : > { %v1969_v31 = vmax.f32 %v1841_v27, 0.0 }
 0x1ca   : > { %v2033_v32 = vmax.f32 %v1905_v28, 0.0  ;;  %v1261_v33 = vpop.f32.mrb[48].mxu0  ;;  %v1517_v34 = vpop.f32.mrb[48].mxu1 }
 0x1cb   : > { %v3291_v35 = vpack.c.bf16 %v1969_v31, %v1968_v29  ;;  %v1707_v37 = vmul.f32 %v4385_v63, %v1261_v33  ;;  %v1771_v38 = vmul.f32 %v4385_v63, %v1517_v34  ;;  %v1263_v39 = vpop.f32.mrb[49].mxu0  ;;  %v1519_v40 = vpop.f32.mrb[49].mxu1 }
 0x1cc   : > { %v3451_v36 = vpack.c.bf16 %v2033_v32, %v2032_v30  ;;  %v1264_v41 = vpop.f32.mrb[50].mxu0  ;;  %v1520_v42 = vpop.f32.mrb[50].mxu1 }
 0x1cd   : > { %3563 = vst [vmem:[%s4411_s10 + $0x58] sm:$0xff] %v3291_v35   ;;  %v1842_v43 = vadd.f32 %v4390_v1, %v1707_v37  ;;  %v1906_v44 = vadd.f32 %v4390_v1, %v1771_v38  ;;  %v1708_v45 = vmul.f32 %v4385_v63, %v1264_v41  ;;  %v1772_v46 = vmul.f32 %v4385_v63, %v1520_v42  ;;  %v1266_v47 = vpop.f32.mrb[51].mxu0  ;;  %v1522_v48 = vpop.f32.mrb[51].mxu1 }
 0x1ce   : > { %3595 = vst [vmem:[%s4411_s10 + $0x158] sm:$0xff] %v3451_v36  }
 0x1cf   : > { %v1843_v49 = vadd.f32 %v4390_v1, %v1708_v45  ;;  %v1907_v50 = vadd.f32 %v4390_v1, %v1772_v46  ;;  %v1970_v51 = vmax.f32 %v1842_v43, 0.0  ;;  %v2034_v52 = vmax.f32 %v1906_v44, 0.0 }
 0x1d1   : > { %v1971_v53 = vmax.f32 %v1843_v49, 0.0  ;;  %v2035_v54 = vmax.f32 %v1907_v50, 0.0 }
 0x1d2   : > { %v1269_v55 = vpop.f32.mrb[52].mxu0  ;;  %v1525_v56 = vpop.f32.mrb[52].mxu1 }
 0x1d3   : > { %v3296_v57 = vpack.c.bf16 %v1971_v53, %v1970_v51  ;;  %v3456_v58 = vpack.c.bf16 %v2035_v54, %v2034_v52  ;;  %v1709_v59 = vmul.f32 %v4385_v63, %v1269_v55  ;;  %v1773_v60 = vmul.f32 %v4385_v63, %v1525_v56  ;;  %v1271_v61 = vpop.f32.mrb[53].mxu0  ;;  %v1527_v62 = vpop.f32.mrb[53].mxu1 }
 0x1d4   : > { %v1272_v0 = vpop.f32.mrb[54].mxu0  ;;  %v1528_v2 = vpop.f32.mrb[54].mxu1 }
 0x1d5   : > { %3564 = vst [vmem:[%s4411_s10 + $0x60] sm:$0xff] %v3296_v57   ;;  %3596 = vst [vmem:[%s4411_s10 + $0x160] sm:$0xff] %v3456_v58   ;;  %v1844_v3 = vadd.f32 %v4390_v1, %v1709_v59  ;;  %v1908_v4 = vadd.f32 %v4390_v1, %v1773_v60  ;;  %v1710_v5 = vmul.f32 %v4385_v63, %v1272_v0  ;;  %v1274_v7 = vpop.f32.mrb[55].mxu0  ;;  %v1530_v8 = vpop.f32.mrb[55].mxu1 }
 0x1d6   : > { %v1774_v6 = vmul.f32 %v4385_v63, %v1528_v2 }
 0x1d7   : > { %v1845_v9 = vadd.f32 %v4390_v1, %v1710_v5  ;;  %v1972_v11 = vmax.f32 %v1844_v3, 0.0  ;;  %v2036_v12 = vmax.f32 %v1908_v4, 0.0 }
 0x1d8   : > { %v1909_v10 = vadd.f32 %v4390_v1, %v1774_v6 }
 0x1d9   : > { %v1973_v13 = vmax.f32 %v1845_v9, 0.0 }
 0x1da   : > { %v2037_v14 = vmax.f32 %v1909_v10, 0.0  ;;  %v1277_v15 = vpop.f32.mrb[56].mxu0  ;;  %v1533_v16 = vpop.f32.mrb[56].mxu1 }
 0x1db   : > { %v3301_v17 = vpack.c.bf16 %v1973_v13, %v1972_v11  ;;  %v1711_v19 = vmul.f32 %v4385_v63, %v1277_v15  ;;  %v1775_v20 = vmul.f32 %v4385_v63, %v1533_v16  ;;  %v1279_v21 = vpop.f32.mrb[57].mxu0  ;;  %v1535_v22 = vpop.f32.mrb[57].mxu1 }
 0x1dc   : > { %v3461_v18 = vpack.c.bf16 %v2037_v14, %v2036_v12  ;;  %v1280_v23 = vpop.f32.mrb[58].mxu0  ;;  %v1536_v24 = vpop.f32.mrb[58].mxu1 }
 0x1dd   : > { %3565 = vst [vmem:[%s4411_s10 + $0x68] sm:$0xff] %v3301_v17   ;;  %v1846_v25 = vadd.f32 %v4390_v1, %v1711_v19  ;;  %v1910_v26 = vadd.f32 %v4390_v1, %v1775_v20  ;;  %v1712_v27 = vmul.f32 %v4385_v63, %v1280_v23  ;;  %v1776_v28 = vmul.f32 %v4385_v63, %v1536_v24  ;;  %v1282_v29 = vpop.f32.mrb[59].mxu0  ;;  %v1538_v30 = vpop.f32.mrb[59].mxu1 }
 0x1de   : > { %3597 = vst [vmem:[%s4411_s10 + $0x168] sm:$0xff] %v3461_v18  }
 0x1df   : > { %v1847_v31 = vadd.f32 %v4390_v1, %v1712_v27  ;;  %v1911_v32 = vadd.f32 %v4390_v1, %v1776_v28  ;;  %v1974_v33 = vmax.f32 %v1846_v25, 0.0  ;;  %v2038_v34 = vmax.f32 %v1910_v26, 0.0 }
 0x1e1   : > { %v1975_v35 = vmax.f32 %v1847_v31, 0.0  ;;  %v2039_v36 = vmax.f32 %v1911_v32, 0.0 }
 0x1e2   : > { %v1285_v37 = vpop.f32.mrb[60].mxu0  ;;  %v1541_v38 = vpop.f32.mrb[60].mxu1 }
 0x1e3   : > { %v3306_v39 = vpack.c.bf16 %v1975_v35, %v1974_v33  ;;  %v3466_v40 = vpack.c.bf16 %v2039_v36, %v2038_v34  ;;  %v1713_v41 = vmul.f32 %v4385_v63, %v1285_v37  ;;  %v1777_v42 = vmul.f32 %v4385_v63, %v1541_v38  ;;  %v1287_v43 = vpop.f32.mrb[61].mxu0  ;;  %v1543_v44 = vpop.f32.mrb[61].mxu1 }
 0x1e4   : > { %v1288_v45 = vpop.f32.mrb[62].mxu0  ;;  %v1544_v46 = vpop.f32.mrb[62].mxu1 }
 0x1e5   : > { %3566 = vst [vmem:[%s4411_s10 + $0x70] sm:$0xff] %v3306_v39   ;;  %3598 = vst [vmem:[%s4411_s10 + $0x170] sm:$0xff] %v3466_v40   ;;  %v1848_v47 = vadd.f32 %v4390_v1, %v1713_v41  ;;  %v1912_v48 = vadd.f32 %v4390_v1, %v1777_v42  ;;  %v1714_v49 = vmul.f32 %v4385_v63, %v1288_v45  ;;  %v1290_v51 = vpop.f32.mrb[63].mxu0  ;;  %v1546_v52 = vpop.f32.mrb[63].mxu1 }
 0x1e6   : > { %v1778_v50 = vmul.f32 %v4385_v63, %v1544_v46 }
 0x1e7   : > { %v1849_v53 = vadd.f32 %v4390_v1, %v1714_v49  ;;  %v1976_v55 = vmax.f32 %v1848_v47, 0.0  ;;  %v2040_v56 = vmax.f32 %v1912_v48, 0.0 }
 0x1e8   : > { %v1913_v54 = vadd.f32 %v4390_v1, %v1778_v50 }
 0x1e9   : > { %v1977_v57 = vmax.f32 %v1849_v53, 0.0 }
 0x1ea   : > { %v2041_v58 = vmax.f32 %v1913_v54, 0.0  ;;  %v1293_v59 = vpop.f32.mrb[64].mxu0  ;;  %v1549_v60 = vpop.f32.mrb[64].mxu1 }
 0x1eb   : > { %v3311_v61 = vpack.c.bf16 %v1977_v57, %v1976_v55  ;;  %v1715_v0 = vmul.f32 %v4385_v63, %v1293_v59  ;;  %v1779_v2 = vmul.f32 %v4385_v63, %v1549_v60  ;;  %v1295_v3 = vpop.f32.mrb[65].mxu0  ;;  %v1551_v4 = vpop.f32.mrb[65].mxu1 }
 0x1ec   : > { %v3471_v62 = vpack.c.bf16 %v2041_v58, %v2040_v56  ;;  %v1296_v5 = vpop.f32.mrb[66].mxu0  ;;  %v1552_v6 = vpop.f32.mrb[66].mxu1 }
 0x1ed   : > { %3567 = vst [vmem:[%s4411_s10 + $0x78] sm:$0xff] %v3311_v61   ;;  %v1850_v7 = vadd.f32 %v4390_v1, %v1715_v0  ;;  %v1914_v8 = vadd.f32 %v4390_v1, %v1779_v2  ;;  %v1716_v9 = vmul.f32 %v4385_v63, %v1296_v5  ;;  %v1780_v10 = vmul.f32 %v4385_v63, %v1552_v6  ;;  %v1298_v11 = vpop.f32.mrb[67].mxu0  ;;  %v1554_v12 = vpop.f32.mrb[67].mxu1 }
 0x1ee   : > { %3599 = vst [vmem:[%s4411_s10 + $0x178] sm:$0xff] %v3471_v62  }
 0x1ef   : > { %v1851_v13 = vadd.f32 %v4390_v1, %v1716_v9  ;;  %v1915_v14 = vadd.f32 %v4390_v1, %v1780_v10  ;;  %v1978_v15 = vmax.f32 %v1850_v7, 0.0  ;;  %v2042_v16 = vmax.f32 %v1914_v8, 0.0 }
 0x1f1   : > { %v1979_v17 = vmax.f32 %v1851_v13, 0.0  ;;  %v2043_v18 = vmax.f32 %v1915_v14, 0.0 }
 0x1f2   : > { %v1301_v19 = vpop.f32.mrb[68].mxu0  ;;  %v1557_v20 = vpop.f32.mrb[68].mxu1 }
 0x1f3   : > { %v3316_v21 = vpack.c.bf16 %v1979_v17, %v1978_v15  ;;  %v3476_v22 = vpack.c.bf16 %v2043_v18, %v2042_v16  ;;  %v1717_v23 = vmul.f32 %v4385_v63, %v1301_v19  ;;  %v1781_v24 = vmul.f32 %v4385_v63, %v1557_v20  ;;  %v1303_v25 = vpop.f32.mrb[69].mxu0  ;;  %v1559_v26 = vpop.f32.mrb[69].mxu1 }
 0x1f4   : > { %v1304_v27 = vpop.f32.mrb[70].mxu0  ;;  %v1560_v28 = vpop.f32.mrb[70].mxu1 }
 0x1f5   : > { %3568 = vst [vmem:[%s4411_s10 + $0x80] sm:$0xff] %v3316_v21   ;;  %3600 = vst [vmem:[%s4411_s10 + $0x180] sm:$0xff] %v3476_v22   ;;  %v1852_v29 = vadd.f32 %v4390_v1, %v1717_v23  ;;  %v1916_v30 = vadd.f32 %v4390_v1, %v1781_v24  ;;  %v1718_v31 = vmul.f32 %v4385_v63, %v1304_v27  ;;  %v1306_v33 = vpop.f32.mrb[71].mxu0  ;;  %v1562_v34 = vpop.f32.mrb[71].mxu1 }
 0x1f6   : > { %v1782_v32 = vmul.f32 %v4385_v63, %v1560_v28 }
 0x1f7   : > { %v1853_v35 = vadd.f32 %v4390_v1, %v1718_v31  ;;  %v1980_v37 = vmax.f32 %v1852_v29, 0.0  ;;  %v2044_v38 = vmax.f32 %v1916_v30, 0.0 }
 0x1f8   : > { %v1917_v36 = vadd.f32 %v4390_v1, %v1782_v32  ;;  %v4623_v32 = vld [vmem:[%s4797_s3] ss:$0 sm:$0xff] }
 0x1f9   : > { %v1981_v39 = vmax.f32 %v1853_v35, 0.0 }
 0x1fa   : > { %v2045_v40 = vmax.f32 %v1917_v36, 0.0  ;;  %v1309_v41 = vpop.f32.mrb[72].mxu0  ;;  %v1565_v42 = vpop.f32.mrb[72].mxu1 }
 0x1fb   : > { %v3321_v43 = vpack.c.bf16 %v1981_v39, %v1980_v37  ;;  %v1719_v45 = vmul.f32 %v4385_v63, %v1309_v41  ;;  %v1783_v46 = vmul.f32 %v4385_v63, %v1565_v42  ;;  %v1311_v47 = vpop.f32.mrb[73].mxu0  ;;  %v1567_v48 = vpop.f32.mrb[73].mxu1 }
 0x1fc   : > { %v3481_v44 = vpack.c.bf16 %v2045_v40, %v2044_v38  ;;  %v1312_v49 = vpop.f32.mrb[74].mxu0  ;;  %v1568_v50 = vpop.f32.mrb[74].mxu1 }
 0x1fd   : > { %3569 = vst [vmem:[%s4411_s10 + $0x88] sm:$0xff] %v3321_v43   ;;  %v1854_v51 = vadd.f32 %v4390_v1, %v1719_v45  ;;  %v1918_v52 = vadd.f32 %v4390_v1, %v1783_v46  ;;  %v1720_v53 = vmul.f32 %v4385_v63, %v1312_v49  ;;  %v1784_v54 = vmul.f32 %v4385_v63, %v1568_v50  ;;  %v1314_v55 = vpop.f32.mrb[75].mxu0  ;;  %v1570_v56 = vpop.f32.mrb[75].mxu1 }
 0x1fe   : > { %3601 = vst [vmem:[%s4411_s10 + $0x188] sm:$0xff] %v3481_v44  }
 0x1ff   : > { %v1855_v57 = vadd.f32 %v4390_v1, %v1720_v53  ;;  %v1919_v58 = vadd.f32 %v4390_v1, %v1784_v54  ;;  %v1982_v59 = vmax.f32 %v1854_v51, 0.0  ;;  %v2046_v60 = vmax.f32 %v1918_v52, 0.0 }
 0x201   : > { %v1983_v61 = vmax.f32 %v1855_v57, 0.0  ;;  %v2047_v62 = vmax.f32 %v1919_v58, 0.0 }
 0x202   : > { %v1317_v0 = vpop.f32.mrb[76].mxu0  ;;  %v1573_v2 = vpop.f32.mrb[76].mxu1 }
 0x203   : > { %v3326_v3 = vpack.c.bf16 %v1983_v61, %v1982_v59  ;;  %v3486_v4 = vpack.c.bf16 %v2047_v62, %v2046_v60  ;;  %v1721_v5 = vmul.f32 %v4385_v63, %v1317_v0  ;;  %v1785_v6 = vmul.f32 %v4385_v63, %v1573_v2  ;;  %v1319_v7 = vpop.f32.mrb[77].mxu0  ;;  %v1575_v8 = vpop.f32.mrb[77].mxu1 }
 0x204   : > { %v1320_v9 = vpop.f32.mrb[78].mxu0  ;;  %v1576_v10 = vpop.f32.mrb[78].mxu1 }
 0x205   : > { %3570 = vst [vmem:[%s4411_s10 + $0x90] sm:$0xff] %v3326_v3   ;;  %3602 = vst [vmem:[%s4411_s10 + $0x190] sm:$0xff] %v3486_v4   ;;  %v1856_v11 = vadd.f32 %v4390_v1, %v1721_v5  ;;  %v1920_v12 = vadd.f32 %v4390_v1, %v1785_v6  ;;  %v1722_v13 = vmul.f32 %v4385_v63, %v1320_v9  ;;  %v1322_v15 = vpop.f32.mrb[79].mxu0  ;;  %v1578_v16 = vpop.f32.mrb[79].mxu1 }
 0x206   : > { %v1786_v14 = vmul.f32 %v4385_v63, %v1576_v10  ;;  %v4614_v63 = vld [vmem:[%s4796_s2] ss:$0 sm:$0xff] }
 0x207   : > { %v1857_v17 = vadd.f32 %v4390_v1, %v1722_v13  ;;  %v1984_v19 = vmax.f32 %v1856_v11, 0.0  ;;  %v2048_v20 = vmax.f32 %v1920_v12, 0.0 }
 0x208   : > { %v1921_v18 = vadd.f32 %v4390_v1, %v1786_v14 }
 0x209   : > { %v1985_v21 = vmax.f32 %v1857_v17, 0.0 }
 0x20a   : > { %v2049_v22 = vmax.f32 %v1921_v18, 0.0  ;;  %v1325_v23 = vpop.f32.mrb[80].mxu0  ;;  %v1581_v24 = vpop.f32.mrb[80].mxu1 }
 0x20b   : > { %v3331_v25 = vpack.c.bf16 %v1985_v21, %v1984_v19  ;;  %v1723_v27 = vmul.f32 %v4614_v63, %v1325_v23  ;;  %v1787_v28 = vmul.f32 %v4614_v63, %v1581_v24  ;;  %v1327_v1 = vpop.f32.mrb[81].mxu0  ;;  %v1583_v29 = vpop.f32.mrb[81].mxu1 }
 0x20c   : > { %v3491_v26 = vpack.c.bf16 %v2049_v22, %v2048_v20  ;;  %v1328_v30 = vpop.f32.mrb[82].mxu0  ;;  %v1584_v31 = vpop.f32.mrb[82].mxu1 }
 0x20d   : > { %3571 = vst [vmem:[%s4411_s10 + $0x98] sm:$0xff] %v3331_v25   ;;  %v1858_v33 = vadd.f32 %v4623_v32, %v1723_v27  ;;  %v1922_v34 = vadd.f32 %v4623_v32, %v1787_v28  ;;  %v1724_v35 = vmul.f32 %v4614_v63, %v1328_v30  ;;  %v1788_v36 = vmul.f32 %v4614_v63, %v1584_v31  ;;  %v1330_v37 = vpop.f32.mrb[83].mxu0  ;;  %v1586_v38 = vpop.f32.mrb[83].mxu1 }
 0x20e   : > { %3603 = vst [vmem:[%s4411_s10 + $0x198] sm:$0xff] %v3491_v26  }
 0x20f   : > { %v1859_v39 = vadd.f32 %v4623_v32, %v1724_v35  ;;  %v1923_v40 = vadd.f32 %v4623_v32, %v1788_v36  ;;  %v1986_v41 = vmax.f32 %v1858_v33, 0.0  ;;  %v2050_v42 = vmax.f32 %v1922_v34, 0.0 }
 0x211   : > { %v1987_v43 = vmax.f32 %v1859_v39, 0.0  ;;  %v2051_v44 = vmax.f32 %v1923_v40, 0.0 }
 0x212   : > { %v1333_v45 = vpop.f32.mrb[84].mxu0  ;;  %v1589_v46 = vpop.f32.mrb[84].mxu1 }
 0x213   : > { %v3336_v47 = vpack.c.bf16 %v1987_v43, %v1986_v41  ;;  %v3496_v48 = vpack.c.bf16 %v2051_v44, %v2050_v42  ;;  %v1725_v49 = vmul.f32 %v4614_v63, %v1333_v45  ;;  %v1789_v50 = vmul.f32 %v4614_v63, %v1589_v46  ;;  %v1335_v51 = vpop.f32.mrb[85].mxu0  ;;  %v1591_v52 = vpop.f32.mrb[85].mxu1 }
 0x214   : > { %v1336_v53 = vpop.f32.mrb[86].mxu0  ;;  %v1592_v54 = vpop.f32.mrb[86].mxu1 }
 0x215   : > { %3572 = vst [vmem:[%s4411_s10 + $0xa0] sm:$0xff] %v3336_v47   ;;  %3604 = vst [vmem:[%s4411_s10 + $0x1a0] sm:$0xff] %v3496_v48   ;;  %v1860_v55 = vadd.f32 %v4623_v32, %v1725_v49  ;;  %v1924_v56 = vadd.f32 %v4623_v32, %v1789_v50  ;;  %v1726_v57 = vmul.f32 %v4614_v63, %v1336_v53  ;;  %v1338_v59 = vpop.f32.mrb[87].mxu0  ;;  %v1594_v60 = vpop.f32.mrb[87].mxu1 }
 0x216   : > { %v1790_v58 = vmul.f32 %v4614_v63, %v1592_v54 }
 0x217   : > { %v1861_v61 = vadd.f32 %v4623_v32, %v1726_v57  ;;  %v1988_v0 = vmax.f32 %v1860_v55, 0.0  ;;  %v2052_v2 = vmax.f32 %v1924_v56, 0.0 }
 0x218   : > { %v1925_v62 = vadd.f32 %v4623_v32, %v1790_v58 }
 0x219   : > { %v1989_v3 = vmax.f32 %v1861_v61, 0.0 }
 0x21a   : > { %v2053_v4 = vmax.f32 %v1925_v62, 0.0  ;;  %v1341_v5 = vpop.f32.mrb[88].mxu0  ;;  %v1597_v6 = vpop.f32.mrb[88].mxu1 }
 0x21b   : > { %v3341_v7 = vpack.c.bf16 %v1989_v3, %v1988_v0  ;;  %v1727_v9 = vmul.f32 %v4614_v63, %v1341_v5  ;;  %v1791_v10 = vmul.f32 %v4614_v63, %v1597_v6  ;;  %v1343_v11 = vpop.f32.mrb[89].mxu0  ;;  %v1599_v12 = vpop.f32.mrb[89].mxu1 }
 0x21c   : > { %v3501_v8 = vpack.c.bf16 %v2053_v4, %v2052_v2  ;;  %v1344_v13 = vpop.f32.mrb[90].mxu0  ;;  %v1600_v14 = vpop.f32.mrb[90].mxu1 }
 0x21d   : > { %3573 = vst [vmem:[%s4411_s10 + $0xa8] sm:$0xff] %v3341_v7   ;;  %v1862_v15 = vadd.f32 %v4623_v32, %v1727_v9  ;;  %v1926_v16 = vadd.f32 %v4623_v32, %v1791_v10  ;;  %v1728_v17 = vmul.f32 %v4614_v63, %v1344_v13  ;;  %v1792_v18 = vmul.f32 %v4614_v63, %v1600_v14  ;;  %v1346_v19 = vpop.f32.mrb[91].mxu0  ;;  %v1602_v20 = vpop.f32.mrb[91].mxu1 }
 0x21e   : > { %3605 = vst [vmem:[%s4411_s10 + $0x1a8] sm:$0xff] %v3501_v8  }
 0x21f   : > { %v1863_v21 = vadd.f32 %v4623_v32, %v1728_v17  ;;  %v1927_v22 = vadd.f32 %v4623_v32, %v1792_v18  ;;  %v1990_v23 = vmax.f32 %v1862_v15, 0.0  ;;  %v2054_v24 = vmax.f32 %v1926_v16, 0.0 }
 0x221   : > { %v1991_v25 = vmax.f32 %v1863_v21, 0.0  ;;  %v2055_v26 = vmax.f32 %v1927_v22, 0.0 }
 0x222   : > { %v1349_v27 = vpop.f32.mrb[92].mxu0  ;;  %v1605_v28 = vpop.f32.mrb[92].mxu1 }
 0x223   : > { %v3346_v1 = vpack.c.bf16 %v1991_v25, %v1990_v23  ;;  %v3506_v29 = vpack.c.bf16 %v2055_v26, %v2054_v24  ;;  %v1729_v30 = vmul.f32 %v4614_v63, %v1349_v27  ;;  %v1793_v31 = vmul.f32 %v4614_v63, %v1605_v28  ;;  %v1351_v33 = vpop.f32.mrb[93].mxu0  ;;  %v1607_v34 = vpop.f32.mrb[93].mxu1 }
 0x224   : > { %v1352_v35 = vpop.f32.mrb[94].mxu0  ;;  %v1608_v36 = vpop.f32.mrb[94].mxu1 }
 0x225   : > { %3574 = vst [vmem:[%s4411_s10 + $0xb0] sm:$0xff] %v3346_v1   ;;  %3606 = vst [vmem:[%s4411_s10 + $0x1b0] sm:$0xff] %v3506_v29   ;;  %v1864_v37 = vadd.f32 %v4623_v32, %v1729_v30  ;;  %v1928_v38 = vadd.f32 %v4623_v32, %v1793_v31  ;;  %v1730_v39 = vmul.f32 %v4614_v63, %v1352_v35  ;;  %v1354_v41 = vpop.f32.mrb[95].mxu0  ;;  %v1610_v42 = vpop.f32.mrb[95].mxu1 }
 0x226   : > { %v1794_v40 = vmul.f32 %v4614_v63, %v1608_v36 }
 0x227   : > { %v1865_v43 = vadd.f32 %v4623_v32, %v1730_v39  ;;  %v1992_v45 = vmax.f32 %v1864_v37, 0.0  ;;  %v2056_v46 = vmax.f32 %v1928_v38, 0.0 }
 0x228   : > { %v1929_v44 = vadd.f32 %v4623_v32, %v1794_v40 }
 0x229   : > { %v1993_v47 = vmax.f32 %v1865_v43, 0.0 }
 0x22a   : > { %v2057_v48 = vmax.f32 %v1929_v44, 0.0  ;;  %v1357_v49 = vpop.f32.mrb[96].mxu0  ;;  %v1613_v50 = vpop.f32.mrb[96].mxu1 }
 0x22b   : > { %v3351_v51 = vpack.c.bf16 %v1993_v47, %v1992_v45  ;;  %v1731_v53 = vmul.f32 %v4614_v63, %v1357_v49  ;;  %v1795_v54 = vmul.f32 %v4614_v63, %v1613_v50  ;;  %v1359_v55 = vpop.f32.mrb[97].mxu0  ;;  %v1615_v56 = vpop.f32.mrb[97].mxu1 }
 0x22c   : > { %v3511_v52 = vpack.c.bf16 %v2057_v48, %v2056_v46  ;;  %v1360_v57 = vpop.f32.mrb[98].mxu0  ;;  %v1616_v58 = vpop.f32.mrb[98].mxu1 }
 0x22d   : > { %3575 = vst [vmem:[%s4411_s10 + $0xb8] sm:$0xff] %v3351_v51   ;;  %v1866_v59 = vadd.f32 %v4623_v32, %v1731_v53  ;;  %v1930_v60 = vadd.f32 %v4623_v32, %v1795_v54  ;;  %v1732_v61 = vmul.f32 %v4614_v63, %v1360_v57  ;;  %v1796_v62 = vmul.f32 %v4614_v63, %v1616_v58  ;;  %v1362_v0 = vpop.f32.mrb[99].mxu0  ;;  %v1618_v2 = vpop.f32.mrb[99].mxu1 }
 0x22e   : > { %3607 = vst [vmem:[%s4411_s10 + $0x1b8] sm:$0xff] %v3511_v52  }
 0x22f   : > { %v1867_v3 = vadd.f32 %v4623_v32, %v1732_v61  ;;  %v1931_v4 = vadd.f32 %v4623_v32, %v1796_v62  ;;  %v1994_v5 = vmax.f32 %v1866_v59, 0.0  ;;  %v2058_v6 = vmax.f32 %v1930_v60, 0.0 }
 0x231   : > { %v1995_v7 = vmax.f32 %v1867_v3, 0.0  ;;  %v2059_v8 = vmax.f32 %v1931_v4, 0.0 }
 0x232   : > { %v1365_v9 = vpop.f32.mrb[100].mxu0  ;;  %v1621_v10 = vpop.f32.mrb[100].mxu1 }
 0x233   : > { %v3356_v11 = vpack.c.bf16 %v1995_v7, %v1994_v5  ;;  %v3516_v12 = vpack.c.bf16 %v2059_v8, %v2058_v6  ;;  %v1733_v13 = vmul.f32 %v4614_v63, %v1365_v9  ;;  %v1797_v14 = vmul.f32 %v4614_v63, %v1621_v10  ;;  %v1367_v15 = vpop.f32.mrb[101].mxu0  ;;  %v1623_v16 = vpop.f32.mrb[101].mxu1 }
 0x234   : > { %v1368_v17 = vpop.f32.mrb[102].mxu0  ;;  %v1624_v18 = vpop.f32.mrb[102].mxu1 }
 0x235   : > { %3576 = vst [vmem:[%s4411_s10 + $0xc0] sm:$0xff] %v3356_v11   ;;  %3608 = vst [vmem:[%s4411_s10 + $0x1c0] sm:$0xff] %v3516_v12   ;;  %v1868_v19 = vadd.f32 %v4623_v32, %v1733_v13  ;;  %v1932_v20 = vadd.f32 %v4623_v32, %v1797_v14  ;;  %v1734_v21 = vmul.f32 %v4614_v63, %v1368_v17  ;;  %v1370_v23 = vpop.f32.mrb[103].mxu0  ;;  %v1626_v24 = vpop.f32.mrb[103].mxu1 }
 0x236   : > { %v1798_v22 = vmul.f32 %v4614_v63, %v1624_v18 }
 0x237   : > { %v1869_v25 = vadd.f32 %v4623_v32, %v1734_v21  ;;  %v1996_v27 = vmax.f32 %v1868_v19, 0.0  ;;  %v2060_v28 = vmax.f32 %v1932_v20, 0.0 }
 0x238   : > { %v1933_v26 = vadd.f32 %v4623_v32, %v1798_v22 }
 0x239   : > { %v1997_v1 = vmax.f32 %v1869_v25, 0.0 }
 0x23a   : > { %v2061_v29 = vmax.f32 %v1933_v26, 0.0  ;;  %v1373_v30 = vpop.f32.mrb[104].mxu0  ;;  %v1629_v31 = vpop.f32.mrb[104].mxu1 }
 0x23b   : > { %v3361_v33 = vpack.c.bf16 %v1997_v1, %v1996_v27  ;;  %v1735_v35 = vmul.f32 %v4614_v63, %v1373_v30  ;;  %v1799_v36 = vmul.f32 %v4614_v63, %v1629_v31  ;;  %v1375_v37 = vpop.f32.mrb[105].mxu0  ;;  %v1631_v38 = vpop.f32.mrb[105].mxu1 }
 0x23c   : > { %v3521_v34 = vpack.c.bf16 %v2061_v29, %v2060_v28  ;;  %v1376_v39 = vpop.f32.mrb[106].mxu0  ;;  %v1632_v40 = vpop.f32.mrb[106].mxu1 }
 0x23d   : > { %3577 = vst [vmem:[%s4411_s10 + $0xc8] sm:$0xff] %v3361_v33   ;;  %v1870_v41 = vadd.f32 %v4623_v32, %v1735_v35  ;;  %v1934_v42 = vadd.f32 %v4623_v32, %v1799_v36  ;;  %v1736_v43 = vmul.f32 %v4614_v63, %v1376_v39  ;;  %v1800_v44 = vmul.f32 %v4614_v63, %v1632_v40  ;;  %v1378_v45 = vpop.f32.mrb[107].mxu0  ;;  %v1634_v46 = vpop.f32.mrb[107].mxu1 }
 0x23e   : > { %3609 = vst [vmem:[%s4411_s10 + $0x1c8] sm:$0xff] %v3521_v34  }
 0x23f   : > { %v1871_v47 = vadd.f32 %v4623_v32, %v1736_v43  ;;  %v1935_v48 = vadd.f32 %v4623_v32, %v1800_v44  ;;  %v1998_v49 = vmax.f32 %v1870_v41, 0.0  ;;  %v2062_v50 = vmax.f32 %v1934_v42, 0.0 }
 0x241   : > { %v1999_v51 = vmax.f32 %v1871_v47, 0.0  ;;  %v2063_v52 = vmax.f32 %v1935_v48, 0.0 }
 0x242   : > { %v1381_v53 = vpop.f32.mrb[108].mxu0  ;;  %v1637_v54 = vpop.f32.mrb[108].mxu1 }
 0x243   : > { %v3366_v55 = vpack.c.bf16 %v1999_v51, %v1998_v49  ;;  %v3526_v56 = vpack.c.bf16 %v2063_v52, %v2062_v50  ;;  %v1737_v57 = vmul.f32 %v4614_v63, %v1381_v53  ;;  %v1801_v58 = vmul.f32 %v4614_v63, %v1637_v54  ;;  %v1383_v59 = vpop.f32.mrb[109].mxu0  ;;  %v1639_v60 = vpop.f32.mrb[109].mxu1 }
 0x244   : > { %v1384_v61 = vpop.f32.mrb[110].mxu0  ;;  %v1640_v62 = vpop.f32.mrb[110].mxu1 }
 0x245   : > { %3578 = vst [vmem:[%s4411_s10 + $0xd0] sm:$0xff] %v3366_v55   ;;  %3610 = vst [vmem:[%s4411_s10 + $0x1d0] sm:$0xff] %v3526_v56   ;;  %v1872_v0 = vadd.f32 %v4623_v32, %v1737_v57  ;;  %v1936_v2 = vadd.f32 %v4623_v32, %v1801_v58  ;;  %v1738_v3 = vmul.f32 %v4614_v63, %v1384_v61  ;;  %v1386_v5 = vpop.f32.mrb[111].mxu0  ;;  %v1642_v6 = vpop.f32.mrb[111].mxu1 }
 0x246   : > { %v1802_v4 = vmul.f32 %v4614_v63, %v1640_v62 }
 0x247   : > { %v1873_v7 = vadd.f32 %v4623_v32, %v1738_v3  ;;  %v2000_v9 = vmax.f32 %v1872_v0, 0.0  ;;  %v2064_v10 = vmax.f32 %v1936_v2, 0.0 }
 0x248   : > { %v1937_v8 = vadd.f32 %v4623_v32, %v1802_v4 }
 0x249   : > { %v2001_v11 = vmax.f32 %v1873_v7, 0.0 }
 0x24a   : > { %v2065_v12 = vmax.f32 %v1937_v8, 0.0  ;;  %v1389_v13 = vpop.f32.mrb[112].mxu0  ;;  %v1645_v14 = vpop.f32.mrb[112].mxu1 }
 0x24b   : > { %v3371_v15 = vpack.c.bf16 %v2001_v11, %v2000_v9  ;;  %v1739_v17 = vmul.f32 %v4614_v63, %v1389_v13  ;;  %v1803_v18 = vmul.f32 %v4614_v63, %v1645_v14  ;;  %v1391_v19 = vpop.f32.mrb[113].mxu0  ;;  %v1647_v20 = vpop.f32.mrb[113].mxu1 }
 0x24c   : > { %v3531_v16 = vpack.c.bf16 %v2065_v12, %v2064_v10  ;;  %v1392_v21 = vpop.f32.mrb[114].mxu0  ;;  %v1648_v22 = vpop.f32.mrb[114].mxu1 }
 0x24d   : > { %3579 = vst [vmem:[%s4411_s10 + $0xd8] sm:$0xff] %v3371_v15   ;;  %v1874_v23 = vadd.f32 %v4623_v32, %v1739_v17  ;;  %v1938_v24 = vadd.f32 %v4623_v32, %v1803_v18  ;;  %v1740_v25 = vmul.f32 %v4614_v63, %v1392_v21  ;;  %v1804_v26 = vmul.f32 %v4614_v63, %v1648_v22  ;;  %v1394_v27 = vpop.f32.mrb[115].mxu0  ;;  %v1650_v28 = vpop.f32.mrb[115].mxu1 }
 0x24e   : > { %3611 = vst [vmem:[%s4411_s10 + $0x1d8] sm:$0xff] %v3531_v16  }
 0x24f   : > { %v1875_v1 = vadd.f32 %v4623_v32, %v1740_v25  ;;  %v1939_v29 = vadd.f32 %v4623_v32, %v1804_v26  ;;  %v2002_v30 = vmax.f32 %v1874_v23, 0.0  ;;  %v2066_v31 = vmax.f32 %v1938_v24, 0.0 }
 0x251   : > { %v2003_v33 = vmax.f32 %v1875_v1, 0.0  ;;  %v2067_v34 = vmax.f32 %v1939_v29, 0.0 }
 0x252   : > { %v1397_v35 = vpop.f32.mrb[116].mxu0  ;;  %v1653_v36 = vpop.f32.mrb[116].mxu1 }
 0x253   : > { %v3376_v37 = vpack.c.bf16 %v2003_v33, %v2002_v30  ;;  %v3536_v38 = vpack.c.bf16 %v2067_v34, %v2066_v31  ;;  %v1741_v39 = vmul.f32 %v4614_v63, %v1397_v35  ;;  %v1805_v40 = vmul.f32 %v4614_v63, %v1653_v36  ;;  %v1399_v41 = vpop.f32.mrb[117].mxu0  ;;  %v1655_v42 = vpop.f32.mrb[117].mxu1 }
 0x254   : > { %v1400_v43 = vpop.f32.mrb[118].mxu0  ;;  %v1656_v44 = vpop.f32.mrb[118].mxu1 }
 0x255   : > { %3580 = vst [vmem:[%s4411_s10 + $0xe0] sm:$0xff] %v3376_v37   ;;  %3612 = vst [vmem:[%s4411_s10 + $0x1e0] sm:$0xff] %v3536_v38   ;;  %v1876_v45 = vadd.f32 %v4623_v32, %v1741_v39  ;;  %v1940_v46 = vadd.f32 %v4623_v32, %v1805_v40  ;;  %v1742_v47 = vmul.f32 %v4614_v63, %v1400_v43  ;;  %v1402_v49 = vpop.f32.mrb[119].mxu0  ;;  %v1658_v50 = vpop.f32.mrb[119].mxu1 }
 0x256   : > { %v1806_v48 = vmul.f32 %v4614_v63, %v1656_v44 }
 0x257   : > { %v1877_v51 = vadd.f32 %v4623_v32, %v1742_v47  ;;  %v2004_v53 = vmax.f32 %v1876_v45, 0.0  ;;  %v2068_v54 = vmax.f32 %v1940_v46, 0.0 }
 0x258   : > { %v1941_v52 = vadd.f32 %v4623_v32, %v1806_v48 }
 0x259   : > { %v2005_v55 = vmax.f32 %v1877_v51, 0.0 }
 0x25a   : > { %v2069_v56 = vmax.f32 %v1941_v52, 0.0  ;;  %v1405_v57 = vpop.f32.mrb[120].mxu0  ;;  %v1661_v58 = vpop.f32.mrb[120].mxu1 }
 0x25b   : > { %v3381_v59 = vpack.c.bf16 %v2005_v55, %v2004_v53  ;;  %v1743_v61 = vmul.f32 %v4614_v63, %v1405_v57  ;;  %v1807_v62 = vmul.f32 %v4614_v63, %v1661_v58  ;;  %v1407_v0 = vpop.f32.mrb[121].mxu0  ;;  %v1663_v2 = vpop.f32.mrb[121].mxu1 }
 0x25c   : > { %v3541_v60 = vpack.c.bf16 %v2069_v56, %v2068_v54  ;;  %v1408_v3 = vpop.f32.mrb[122].mxu0  ;;  %v1664_v4 = vpop.f32.mrb[122].mxu1 }
 0x25d   : > { %3581 = vst [vmem:[%s4411_s10 + $0xe8] sm:$0xff] %v3381_v59   ;;  %v1878_v5 = vadd.f32 %v4623_v32, %v1743_v61  ;;  %v1942_v6 = vadd.f32 %v4623_v32, %v1807_v62  ;;  %v1744_v7 = vmul.f32 %v4614_v63, %v1408_v3  ;;  %v1808_v8 = vmul.f32 %v4614_v63, %v1664_v4  ;;  %v1410_v9 = vpop.f32.mrb[123].mxu0  ;;  %v1666_v10 = vpop.f32.mrb[123].mxu1 }
 0x25e   : > { %3613 = vst [vmem:[%s4411_s10 + $0x1e8] sm:$0xff] %v3541_v60  }
 0x25f   : > { %v1879_v11 = vadd.f32 %v4623_v32, %v1744_v7  ;;  %v1943_v12 = vadd.f32 %v4623_v32, %v1808_v8  ;;  %v2006_v13 = vmax.f32 %v1878_v5, 0.0  ;;  %v2070_v14 = vmax.f32 %v1942_v6, 0.0 }
 0x261   : > { %v2007_v15 = vmax.f32 %v1879_v11, 0.0  ;;  %v2071_v16 = vmax.f32 %v1943_v12, 0.0 }
 0x262   : > { %v1413_v17 = vpop.f32.mrb[124].mxu0  ;;  %v1669_v18 = vpop.f32.mrb[124].mxu1 }
 0x263   : > { %v3386_v19 = vpack.c.bf16 %v2007_v15, %v2006_v13  ;;  %v3546_v20 = vpack.c.bf16 %v2071_v16, %v2070_v14  ;;  %v1745_v21 = vmul.f32 %v4614_v63, %v1413_v17  ;;  %v1809_v22 = vmul.f32 %v4614_v63, %v1669_v18  ;;  %v1415_v23 = vpop.f32.mrb[125].mxu0  ;;  %v1671_v24 = vpop.f32.mrb[125].mxu1 }
 0x264   : > { %v1416_v25 = vpop.f32.mrb[126].mxu0  ;;  %v1672_v26 = vpop.f32.mrb[126].mxu1 }
 0x265   : > { %3582 = vst [vmem:[%s4411_s10 + $0xf0] sm:$0xff] %v3386_v19   ;;  %3614 = vst [vmem:[%s4411_s10 + $0x1f0] sm:$0xff] %v3546_v20   ;;  %v1880_v27 = vadd.f32 %v4623_v32, %v1745_v21  ;;  %v1944_v28 = vadd.f32 %v4623_v32, %v1809_v22  ;;  %v1746_v1 = vmul.f32 %v4614_v63, %v1416_v25  ;;  %v1418_v30 = vpop.f32.mrb[127].mxu0  ;;  %v1674_v31 = vpop.f32.mrb[127].mxu1 }
 0x266   : > { %v1810_v29 = vmul.f32 %v4614_v63, %v1672_v26 }
 0x267   : > { %v1881_v33 = vadd.f32 %v4623_v32, %v1746_v1  ;;  %v2008_v35 = vmax.f32 %v1880_v27, 0.0  ;;  %v2072_v36 = vmax.f32 %v1944_v28, 0.0 }
 0x268   : > { %v1945_v34 = vadd.f32 %v4623_v32, %v1810_v29 }
 0x269   : > { %v2009_v37 = vmax.f32 %v1881_v33, 0.0 }
 0x26a   : > { %v2073_v38 = vmax.f32 %v1945_v34, 0.0 }
 0x26b   : > { %v3391_v63 = vpack.c.bf16 %v2009_v37, %v2008_v35 }
 0x26c   : > { %v3551_v39 = vpack.c.bf16 %v2073_v38, %v2072_v36 }
 0x26d   : > { %3583 = vst [vmem:[%s4411_s10 + $0xf8] sm:$0xff] %v3391_v63  }
 0x26e   : > { %3615 = vst [vmem:[%s4411_s10 + $0x1f8] sm:$0xff] %v3551_v39  }
 0x26f   : > { %3993 = shalt.err (!%p3990_p7)
}
 0x270   : > { %s3994_s28 = scalar_lea.hbm %s4746_s14, 8192  ;;  %s3998_s6 = scalar_lea.hbm %s4798_s4, 16384 }
 0x271   : > { %p3995_p9 = scmp.ne.s32.totalorder %s4746_s14, %s3994_s28  ;;  %p3999_p5 = scmp.lt.u32.totalorder %s4746_s14, %s4798_s4 }
 0x272   : > { %p4000_p11 = scmp.lt.u32.totalorder %s3998_s6, %s3994_s28  ;;  %p4002_p4 = scmp.lt.u32.totalorder %s3994_s28, %s4746_s14 }
 0x273   : > { %p3996_p2 = pnand %p3995_p9, %p4178_p12 }
 0x274   : > { %p4001_p1 = por %p4000_p11, %p3999_p5 }
 0x275   : > { %p3997_p0 = pneg %p3996_p2 }
 0x276   : > { %p4003_p6 = por %p4002_p4, %p4001_p1 }
 0x278   : > { %p4004_p8 = pnand %p4003_p6, %p3997_p0 }
 0x27a   : > { %4007 = shalt.err (!%p4004_p8)
}
 0x27b   : > { %s4060_s26 = smov 64   ;;  %s4061_s8 = smov 4  }
 0x27c   : > { %3654 = dma.vmem_to_hbm [thread:$0]  (%p4178_p12), %s4748_s25, 8192, %s4746_s14, %s2715_s19, %s4060_s26, %s4060_s26, %s4061_s8  }
 0x27d PF: > { %s2743_s11 = sand.u32 1, %s4038_s15   ;;  %p4813_p10 = scmp.ne.s32.totalorder %s4803_s22, 0 }
 0x27e   : > { %p4814_p13 = scmp.ge.s32.totalorder %s4050_s18, 2  ;;  %s2744_s13 = scalar_lea.sflag [#allocation4], %s2743_s11 }
 0x280   : > { %p3665_p3 = pnand %p4814_p13, %p4813_p10 }
 0x282   : > { %4033 = dma.done.wait (!%p3665_p3), %s2744_s13, 8192  }
 0x283   : > { %4035 = vsyncadd (!%p3665_p3), %s2744_s13, 4294959104  ;;  %p18_p7 = scmp.ge.s32.totalorder %s4143_s27, 4   ;;  %s4815_s15 = smov %s4042_s16 }
 0x284   : > { %s4816_s16 = smov %s4046_s17  ;;  %s4817_s17 = smov %s4174_s24 }
 0x285   : > { %s4818_s18 = smov %s4143_s27  ;;  %20 = sbr.rel (!%p18_p7) target bundleno = 6 (0x6), region = 85 }
 0x28c   :  { %2749 = vsyncpa [#allocation3], 1 }
 0x28d   :  { %2751 = vsyncpa [#allocation3 + $0x1], 1 }
 0x28e   :  { %2752 = vsyncpa [#allocation6], 1 }
 0x28f   :  { %2753 = vsyncpa [#allocation4], 1 }
 0x290   :  { %2755 = vsyncpa [#allocation4 + $0x1], 1 }

</bundles_post_ra>
